<compile_context>
chip_gen: v7x
topology: tpu7x:2x2x1
jax: 0.10.0
libtpu: 0.0.40
codegen_flags: <defaults>
</compile_context>

<pallas_src>
import functools

import jax
import jax.numpy as jnp
from jax.experimental import pallas as pl
from jax.experimental.pallas import tpu as pltpu

# ---------------- small synthetic config (shapes consistent with the module) ------------
NUM_CLASSES = 1
EDGE_DIM = 4
NUM_ATOM_FEATURES = 16
MAX_DEGREE = 16
NUM_SPATIAL = 16
MULTI_HOP_MAX_DIST = 5
NUM_LAYERS = 2
EMBED_DIM = 32
FFN_DIM = 32
NUM_HEADS = 4
HEAD_DIM = EMBED_DIM // NUM_HEADS          # 8

B = 2                                      # num_graphs
N = 7                                      # max_num_nodes
S = N + 1                                  # +1 graph token
M = B * S                                  # 16 fused rows (tokens first, then nodes)
HM = NUM_HEADS * M                         # 64 head-folded sublane axis
HD = NUM_HEADS * EMBED_DIM                 # 128 block-diag lane axis
QKV_W = 3 * HEAD_DIM                       # 24
WO_BLK = 16                                # per-head padded Wo rows (bf16 sublane pack)
LN_EPS = 1e-5
OUT_LANES = 128                            # lane-dense padded output width
NEG_BIG = -1e9                             # cross-batch / cross-head mask value

assert M == WO_BLK                         # ctx head blocks line up with padded Wo blocks
assert B <= 8                              # graph tokens fit the leading 8-row output tile

# ---------------- f32 slab (width 128) row layout ----------------
F_FEAT = 0                                 # 16 rows : raw atom features (zero on token rows)
F_ADD = F_FEAT + M                         # 16 rows : graph_token / deg_emb + atom bias
F_BIAS = F_ADD + M                         # 64 rows : head+batch folded attention bias
F_BDM = F_BIAS + HM                        # 64 rows : block-diagonal {0,1} replication mask
F_GLOB = F_BDM + HM                        # 8 rows  : global LN / bias vectors
F_EMB_G = F_GLOB + 0
F_EMB_B = F_GLOB + 1
F_LM_B = F_GLOB + 2
F_FIN_G = F_GLOB + 3
F_FIN_B = F_GLOB + 4
F_OUT_B = F_GLOB + 5
F_LAYER0 = F_GLOB + 8                      # per-layer blocks start here
F_LN1G, F_LN1B, F_BO, F_LN2G, F_LN2B, F_B1, F_B2 = 0, 1, 2, 3, 4, 5, 6
F_BQKV = 8                                 # 64 rows of folded q/k/v biases
F_LSIZE = F_BQKV + HM                      # 72 rows per layer
F_ROWS = F_LAYER0 + NUM_LAYERS * F_LSIZE   # 312

# ---------------- bf16 slab (width 128) row layout ----------------
W_ATOM = 0                                 # 16 rows : atom encoder weight
W_LM = W_ATOM + NUM_ATOM_FEATURES          # 32 rows : lm head transform weight
W_OUT = W_LM + EMBED_DIM                   # 32 rows : padded output projection
W_LAYER0 = W_OUT + EMBED_DIM               # per-layer blocks start here (80)
W_QKV = 0                                  # 128 rows: stacked per-head [wq|wk|wv]
W_WO = W_QKV + HD                          # 64 rows : per-head Wo padded to 16 rows
W_W1 = W_WO + NUM_HEADS * WO_BLK           # 32 rows : FFN in
W_W2 = W_W1 + EMBED_DIM                    # 32 rows : FFN out
W_LSIZE = W_W2 + FFN_DIM                   # 256 rows per layer
W_ROWS = W_LAYER0 + NUM_LAYERS * W_LSIZE   # 592


# ---------------- shared math helpers (usable both in-kernel and in JAX) ----------------
def _layernorm(x, g, b):
    mu = jnp.mean(x, axis=-1, keepdims=True)
    var = jnp.mean(jnp.square(x - mu), axis=-1, keepdims=True)
    return (x - mu) * jax.lax.rsqrt(var + LN_EPS) * g + b


def _gelu_tanh(x):
    # tanh-approximate GELU; transcendental goes to the (otherwise idle) EUP slot.
    c0 = 0.7978845608028654
    return 0.5 * x * (1.0 + jnp.tanh(c0 * (x + 0.044715 * (x * x * x))))


# ---------------- the single fused Pallas kernel -----------------------------------------
def _fused_graphormer_kernel(fsl_ref, wsl_ref, o_ref, *, num_layers, num_heads):
    f32 = jnp.float32
    bf16 = jnp.bfloat16
    d = EMBED_DIM
    hd = HEAD_DIM

    # ---- unpack globals (static slices of the two slabs) ----
    feat = fsl_ref[F_FEAT:F_FEAT + M, 0:NUM_ATOM_FEATURES]
    add = fsl_ref[F_ADD:F_ADD + M, 0:d]
    bias64 = fsl_ref[F_BIAS:F_BIAS + HM, 0:HM]
    bdm = fsl_ref[F_BDM:F_BDM + HM, 0:HD]
    emb_g = fsl_ref[F_EMB_G:F_EMB_G + 1, 0:d]
    emb_b = fsl_ref[F_EMB_B:F_EMB_B + 1, 0:d]
    lm_b = fsl_ref[F_LM_B:F_LM_B + 1, 0:d]
    fin_g = fsl_ref[F_FIN_G:F_FIN_G + 1, 0:d]
    fin_b = fsl_ref[F_FIN_B:F_FIN_B + 1, 0:d]
    out_b = fsl_ref[F_OUT_B:F_OUT_B + 1, :]

    atom_w = wsl_ref[W_ATOM:W_ATOM + NUM_ATOM_FEATURES, 0:d]
    lm_w = wsl_ref[W_LM:W_LM + d, 0:d]
    out_w = wsl_ref[W_OUT:W_OUT + d, :]

    # ---- atom encoder + embedding LayerNorm ----
    x = jnp.dot(feat.astype(bf16), atom_w, preferred_element_type=f32) + add
    x = _layernorm(x, emb_g, emb_b)

    for l in range(num_layers):                                  # static unrolled layers
        fb = F_LAYER0 + l * F_LSIZE
        wb = W_LAYER0 + l * W_LSIZE
        ln1_g = fsl_ref[fb + F_LN1G:fb + F_LN1G + 1, 0:d]
        ln1_b = fsl_ref[fb + F_LN1B:fb + F_LN1B + 1, 0:d]
        bo = fsl_ref[fb + F_BO:fb + F_BO + 1, 0:d]
        ln2_g = fsl_ref[fb + F_LN2G:fb + F_LN2G + 1, 0:d]
        ln2_b = fsl_ref[fb + F_LN2B:fb + F_LN2B + 1, 0:d]
        b1 = fsl_ref[fb + F_B1:fb + F_B1 + 1, 0:FFN_DIM]
        b2 = fsl_ref[fb + F_B2:fb + F_B2 + 1, 0:d]
        bqkv = fsl_ref[fb + F_BQKV:fb + F_BQKV + HM, 0:QKV_W]
        wqkv = wsl_ref[wb + W_QKV:wb + W_QKV + HD, 0:QKV_W]
        wo = wsl_ref[wb + W_WO:wb + W_WO + num_heads * WO_BLK, 0:d]
        w1 = wsl_ref[wb + W_W1:wb + W_W1 + d, 0:FFN_DIM]
        w2 = wsl_ref[wb + W_W2:wb + W_W2 + FFN_DIM, 0:d]

        # -------- biased MHA (pre-LN); heads and batch folded into the sublane axis ------
        h = _layernorm(x, ln1_g, ln1_b)                          # (M, D) f32
        # block-diagonal replication: h_bd[g*M+m, g*D+k] = h[m, k], zeros elsewhere
        h_rep = jnp.concatenate([h] * num_heads, axis=0)         # (HM, D)
        h_bd = bdm * jnp.concatenate([h_rep] * num_heads, axis=1)  # (HM, HD)
        # ONE fused QKV matmul for all heads (q-scale folded into wq/bq at pack time)
        qkv = jnp.dot(h_bd.astype(bf16), wqkv, preferred_element_type=f32) + bqkv
        q = qkv[:, 0:hd].astype(bf16)                            # (HM, hd)
        k = qkv[:, hd:2 * hd].astype(bf16)
        v = qkv[:, 2 * hd:3 * hd].astype(bf16)
        # ONE score matmul / ONE softmax / ONE ctx matmul over the folded (HM) axis
        s = jax.lax.dot_general(q, k, (((1,), (1,)), ((), ())),
                                preferred_element_type=f32) + bias64
        s = s - jnp.max(s, axis=-1, keepdims=True)
        p = jnp.exp(s)
        p = p * pl.reciprocal(jnp.sum(p, axis=-1, keepdims=True), approx=True)
        ctx = jnp.dot(p.astype(bf16), v, preferred_element_type=f32)   # (HM, hd)
        # pad ctx to WO_BLK lanes so per-head slices line up with the padded Wo blocks
        ctx = jnp.concatenate(
            [ctx, jnp.zeros((HM, WO_BLK - hd), f32)], axis=1).astype(bf16)
        # output projection accumulated per head (16-row aligned sublane slices)
        attn = jnp.dot(ctx[0:M], wo[0:WO_BLK], preferred_element_type=f32)
        for hh in range(1, num_heads):
            attn = attn + jnp.dot(ctx[hh * M:(hh + 1) * M],
                                  wo[hh * WO_BLK:(hh + 1) * WO_BLK],
                                  preferred_element_type=f32)
        x = x + attn + bo

        # -------- FFN (pre-LN) --------
        h2 = _layernorm(x, ln2_g, ln2_b)
        fo = jnp.dot(h2.astype(bf16), w1, preferred_element_type=f32) + b1
        fo = _gelu_tanh(fo)
        fo = jnp.dot(fo.astype(bf16), w2, preferred_element_type=f32) + b2
        x = x + fo

    # ---- LM head on the leading 8-row sublane group (graph tokens are rows 0..B-1) ----
    xh = x[0:8, :]
    g = jnp.dot(xh.astype(bf16), lm_w, preferred_element_type=f32) + lm_b
    g = _gelu_tanh(g)
    g = _layernorm(g, fin_g, fin_b)
    o_ref[...] = jnp.dot(g.astype(bf16), out_w, preferred_element_type=f32) + out_b


# ---------------- glue: embeddings + attention-bias construction (plain JAX) -------------
# TODO(synk): embedding-table gathers (degree/spatial/path encoders) stay as XLA gathers.
def _build_bias_bhss(params, path_data, dist):
    b, n, _ = dist.shape
    h = NUM_HEADS
    # PathEncoder
    sd = jnp.clip(dist, 1, MULTI_HOP_MAX_DIST).astype(jnp.float32)
    edge_emb = params["path_table"].reshape(MULTI_HOP_MAX_DIST, h, EDGE_DIM)
    path_enc = jnp.einsum("bxyld,lhd->bxyh", path_data, edge_emb) / sd[..., None]
    # SpatialEncoder (padding_idx=0, index = clamp(dist,-1,max)+1)
    spatial_enc = params["spatial_table"][jnp.clip(dist, -1, NUM_SPATIAL) + 1]

    attn_bias = jnp.zeros((b, n + 1, n + 1, h), jnp.float32)
    attn_bias = attn_bias.at[:, 1:, 1:, :].set(path_enc + spatial_enc)
    t = params["gtvd"].reshape(1, 1, h)
    attn_bias = attn_bias.at[:, 1:, 0, :].add(t)
    attn_bias = attn_bias.at[:, 0, :, :].add(t)
    return jnp.transpose(attn_bias, (0, 3, 1, 2))                # (B, H, S, S)


def _prepare_inputs(params, node_feat, in_degree, out_degree, path_data, dist):
    b, n, f = node_feat.shape
    d = EMBED_DIM

    # DegreeEncoder (direction="both", padding_idx=0)
    deg_emb = (params["deg_enc1"][jnp.clip(in_degree, 0, MAX_DEGREE)]
               + params["deg_enc2"][jnp.clip(out_degree, 0, MAX_DEGREE)])       # (B,N,D)

    # Row order: rows 0..B-1 = graph tokens, then node rows grouped by graph.
    feat_in = jnp.concatenate(
        [jnp.zeros((b, f), jnp.float32),
         node_feat.astype(jnp.float32).reshape(b * n, f)], axis=0)              # (M, F)
    gtok = jnp.broadcast_to(params["graph_token"].reshape(1, d), (b, d))
    add_in = jnp.concatenate(
        [gtok, (deg_emb + params["atom_b"]).reshape(b * n, d)], axis=0)         # (M, D)

    # per-row graph id and local (within-graph sequence) index
    gid = jnp.concatenate([jnp.arange(b), jnp.repeat(jnp.arange(b), n)])        # (M,)
    lix = jnp.concatenate([jnp.zeros((b,), jnp.int32),
                           jnp.tile(jnp.arange(1, n + 1), b)])                  # (M,)

    bias_bhss = _build_bias_bhss(params, path_data, dist)                       # (B,H,S,S)
    # vectorized batch fold: gather per-pair bias, mask cross-graph pairs
    gathered = bias_bhss[gid[:, None], :, lix[:, None], lix[None, :]]           # (M, M, H)
    same_g = gid[:, None] == gid[None, :]
    bias_mmh = jnp.where(same_g[:, :, None], gathered, NEG_BIG)
    bias_hmm = jnp.transpose(bias_mmh, (2, 0, 1))                               # (H, M, M)
    # head fold: block-diagonal over heads, -1e9 off the head diagonal
    eye = jnp.eye(NUM_HEADS, dtype=jnp.float32)[:, None, :, None]               # (H,1,H,1)
    big = bias_hmm[:, :, None, :] * eye + NEG_BIG * (1.0 - eye)                 # (H,M,H,M)
    bias_full = big.reshape(HM, HM)
    return feat_in, add_in, bias_full


def _pad128(x, rows=None):
    x = jnp.asarray(x, jnp.float32)
    r, c = x.shape
    rows = r if rows is None else rows
    return jnp.zeros((rows, 128), jnp.float32).at[:r, :c].set(x)


def _pack_f32_slab(params, feat_in, add_in, bias_full):
    scale = HEAD_DIM ** -0.5
    # block-diagonal replication mask for the fused per-head QKV matmul
    rb = jnp.arange(HM)[:, None] // M
    cb = jnp.arange(HD)[None, :] // EMBED_DIM
    bd_mask = (rb == cb).astype(jnp.float32)                                    # (HM, HD)

    outb = jnp.zeros((1, OUT_LANES), jnp.float32).at[:, :NUM_CLASSES].set(
        params["lm_out_bias"])
    glob = jnp.concatenate([
        _pad128(params["emb_ln_g"]), _pad128(params["emb_ln_b"]),
        _pad128(params["lm_b"]), _pad128(params["final_ln_g"]),
        _pad128(params["final_ln_b"]), _pad128(outb),
        jnp.zeros((2, 128), jnp.float32)], axis=0)                              # 8 rows

    blocks = [_pad128(feat_in, M), _pad128(add_in, M),
              _pad128(bias_full, HM), _pad128(bd_mask, HM), glob]
    for lp in params["layers"]:
        vec = jnp.concatenate([
            _pad128(lp["ln1_g"]), _pad128(lp["ln1_b"]), _pad128(lp["bo"]),
            _pad128(lp["ln2_g"]), _pad128(lp["ln2_b"]),
            _pad128(lp["b1"]), _pad128(lp["b2"]),
            jnp.zeros((1, 128), jnp.float32)], axis=0)                          # 8 rows
        bq = lp["bq"].reshape(NUM_HEADS, HEAD_DIM) * scale
        bk = lp["bk"].reshape(NUM_HEADS, HEAD_DIM)
        bv = lp["bv"].reshape(NUM_HEADS, HEAD_DIM)
        bqkv = jnp.repeat(jnp.concatenate([bq, bk, bv], axis=1), M, axis=0)     # (HM, 24)
        blocks += [vec, _pad128(bqkv, HM)]
    fsl = jnp.concatenate(blocks, axis=0)
    assert fsl.shape == (F_ROWS, 128)
    return fsl


def _pack_bf16_slab(params):
    d, h, hd, ffn = EMBED_DIM, NUM_HEADS, HEAD_DIM, FFN_DIM
    scale = hd ** -0.5
    outw = jnp.zeros((d, OUT_LANES), jnp.float32).at[:, :NUM_CLASSES].set(params["out_w"])
    blocks = [
        _pad128(params["atom_w"], NUM_ATOM_FEATURES),
        _pad128(params["lm_w"], d),
        _pad128(outw, d),
    ]
    for lp in params["layers"]:
        # stacked per-head [scale*wq_h | wk_h | wv_h] -> (H*D, 3*hd)
        wq = jnp.transpose(lp["wq"].reshape(d, h, hd), (1, 0, 2)) * scale
        wk = jnp.transpose(lp["wk"].reshape(d, h, hd), (1, 0, 2))
        wv = jnp.transpose(lp["wv"].reshape(d, h, hd), (1, 0, 2))
        qkv = jnp.concatenate([wq, wk, wv], axis=2).reshape(h * d, 3 * hd)
        # per-head Wo blocks (hd, D) zero-padded to WO_BLK rows
        wo = lp["wo"].reshape(h, hd, d)
        wo_pad = jnp.zeros((h, WO_BLK, d), jnp.float32).at[:, :hd, :].set(wo)
        blocks += [
            _pad128(qkv, h * d),
            _pad128(wo_pad.reshape(h * WO_BLK, d), h * WO_BLK),
            _pad128(lp["w1"], d),
            _pad128(lp["w2"], ffn),
        ]
    wsl = jnp.concatenate(blocks, axis=0).astype(jnp.bfloat16)
    assert wsl.shape == (W_ROWS, 128)
    return wsl


# ---------------- forward: one pallas_call (2 slab inputs, 1 lane-dense output) -----------
def graphormer_forward(params, node_feat, in_degree, out_degree, path_data, dist):
    feat_in, add_in, bias_full = _prepare_inputs(
        params, node_feat, in_degree, out_degree, path_data, dist)
    fsl = _pack_f32_slab(params, feat_in, add_in, bias_full)
    wsl = _pack_bf16_slab(params)

    vm = pl.BlockSpec(memory_space=pltpu.MemorySpace.VMEM)
    kernel = functools.partial(
        _fused_graphormer_kernel, num_layers=NUM_LAYERS, num_heads=NUM_HEADS)

    out = pl.pallas_call(
        kernel,
        out_shape=jax.ShapeDtypeStruct((8, OUT_LANES), jnp.float32),
        in_specs=[vm, vm],
        out_specs=vm,
    )(fsl, wsl)

    # graph tokens are rows 0..B-1; keep only the real class columns
    return out[:B, :NUM_CLASSES]


# ---------------- pure-JAX reference (for correctness check) -----------------------------
def _ref_layer(x, bias_bhss, lp):
    b, s, d = x.shape
    h = bias_bhss.shape[1]
    hd = d // h
    hx = _layernorm(x, lp["ln1_g"], lp["ln1_b"])
    q = (hx @ lp["wq"] + lp["bq"]) * hd ** -0.5
    k = hx @ lp["wk"] + lp["bk"]
    v = hx @ lp["wv"] + lp["bv"]
    qh = q.reshape(b, s, h, hd)
    kh = k.reshape(b, s, h, hd)
    vh = v.reshape(b, s, h, hd)
    sc = jnp.einsum("bihd,bjhd->bhij", qh, kh) + bias_bhss
    p = jax.nn.softmax(sc, axis=-1)
    o = jnp.einsum("bhij,bjhd->bihd", p, vh).reshape(b, s, d)
    x = x + (o @ lp["wo"] + lp["bo"])
    h2 = _layernorm(x, lp["ln2_g"], lp["ln2_b"])
    f = jax.nn.gelu(h2 @ lp["w1"] + lp["b1"], approximate=False) @ lp["w2"] + lp["b2"]
    return x + f


def _ref_forward(params, node_feat, in_degree, out_degree, path_data, dist):
    b, n, _ = node_feat.shape
    d = EMBED_DIM
    deg_emb = (params["deg_enc1"][jnp.clip(in_degree, 0, MAX_DEGREE)]
               + params["deg_enc2"][jnp.clip(out_degree, 0, MAX_DEGREE)])
    node_h = node_feat.astype(jnp.float32) @ params["atom_w"] + params["atom_b"] + deg_emb
    gtok = jnp.broadcast_to(params["graph_token"].reshape(1, 1, d), (b, 1, d))
    x = jnp.concatenate([gtok, node_h], axis=1)
    x = _layernorm(x, params["emb_ln_g"], params["emb_ln_b"])
    bias = _build_bias_bhss(params, path_data, dist)
    for lp in params["layers"]:
        x = _ref_layer(x, bias, lp)
    g = x[:, 0, :]
    g = jax.nn.gelu(g @ params["lm_w"] + params["lm_b"], approximate=False)
    g = _layernorm(g, params["final_ln_g"], params["final_ln_b"])
    return g @ params["out_w"] + params["lm_out_bias"]


# ---------------- deterministic parameter init --------------------------------------------
def init_params(key):
    keys = iter(jax.random.split(key, 128))

    def nrm(shape, scale=0.02):
        return (scale * jax.random.normal(next(keys), shape)).astype(jnp.float32)

    d = EMBED_DIM
    p = {
        "atom_w": nrm((NUM_ATOM_FEATURES, d)),
        "atom_b": nrm((1, d)),
        "graph_token": nrm((1, d)),
        "deg_enc1": nrm((MAX_DEGREE + 1, d)).at[0].set(0.0),     # padding_idx=0
        "deg_enc2": nrm((MAX_DEGREE + 1, d)).at[0].set(0.0),     # padding_idx=0
        "path_table": nrm((MULTI_HOP_MAX_DIST * NUM_HEADS, EDGE_DIM)),
        "spatial_table": nrm((NUM_SPATIAL + 2, NUM_HEADS)).at[0].set(0.0),
        "gtvd": nrm((1, NUM_HEADS)),
        "emb_ln_g": jnp.ones((1, d), jnp.float32),
        "emb_ln_b": jnp.zeros((1, d), jnp.float32),
        "lm_w": nrm((d, d)),
        "lm_b": nrm((1, d)),
        "final_ln_g": jnp.ones((1, d), jnp.float32),
        "final_ln_b": jnp.zeros((1, d), jnp.float32),
        "out_w": nrm((d, NUM_CLASSES)),
        "lm_out_bias": jnp.zeros((1, NUM_CLASSES), jnp.float32),
    }
    layers = []
    for _ in range(NUM_LAYERS):
        layers.append({
            "ln1_g": jnp.ones((1, d), jnp.float32),
            "ln1_b": jnp.zeros((1, d), jnp.float32),
            "wq": nrm((d, d)), "bq": nrm((1, d)),
            "wk": nrm((d, d)), "bk": nrm((1, d)),
            "wv": nrm((d, d)), "bv": nrm((1, d)),
            "wo": nrm((d, d)), "bo": nrm((1, d)),
            "ln2_g": jnp.ones((1, d), jnp.float32),
            "ln2_b": jnp.zeros((1, d), jnp.float32),
            "w1": nrm((d, FFN_DIM)), "b1": nrm((1, FFN_DIM)),
            "w2": nrm((FFN_DIM, d)), "b2": nrm((1, d)),
        })
    p["layers"] = layers
    return p


# ---------------- main ---------------------------------------------------------------------
if __name__ == "__main__":
    key = jax.random.PRNGKey(0)
    kp, k1, k2, k3, k4, k5 = jax.random.split(key, 6)
    params = init_params(kp)

    node_feat = jax.random.normal(k1, (B, N, NUM_ATOM_FEATURES), jnp.float32)
    in_degree = jax.random.randint(k2, (B, N), 0, MAX_DEGREE + 1, jnp.int32)
    out_degree = jax.random.randint(k3, (B, N), 0, MAX_DEGREE + 1, jnp.int32)
    path_data = jax.random.normal(
        k4, (B, N, N, MULTI_HOP_MAX_DIST, EDGE_DIM), jnp.float32
    )
    dist = jax.random.randint(k5, (B, N, N), -1, 11, jnp.int32)

    fwd = jax.jit(graphormer_forward)
    out = jax.block_until_ready(
        fwd(params, node_feat, in_degree, out_degree, path_data, dist))

    ref = _ref_forward(params, node_feat, in_degree, out_degree, path_data, dist)

    assert out.shape == (B, NUM_CLASSES)
    assert bool(jnp.all(jnp.isfinite(out)))
    assert bool(jnp.allclose(out, ref, rtol=1e-2, atol=1e-2))
    print("KERNEL_OK")
</pallas_src>

<mosaic_0001>
module attributes {stable_mosaic.version = 11 : i64} {
  func.func @_fused_graphormer_kernel(%arg0: memref<312x128xf32, #tpu.memory_space<vmem>>, %arg1: memref<592x128xbf16, #tpu.memory_space<vmem>>, %arg2: memref<8x128xf32, #tpu.memory_space<vmem>>) attributes {dimension_semantics = [], scalar_prefetch = 0 : i64, scratch_operands = 0 : i64, tpu.core_type = #tpu.core_type<tc>} {
    %c0 = arith.constant 0 : index
    %c0_0 = arith.constant 0 : index
    %0 = vector.load %arg0[%c0, %c0_0] : memref<312x128xf32, #tpu.memory_space<vmem>>, vector<16x16xf32>
    %c16 = arith.constant 16 : index
    %c0_1 = arith.constant 0 : index
    %1 = vector.load %arg0[%c16, %c0_1] : memref<312x128xf32, #tpu.memory_space<vmem>>, vector<16x32xf32>
    %c32 = arith.constant 32 : index
    %c0_2 = arith.constant 0 : index
    %2 = vector.load %arg0[%c32, %c0_2] : memref<312x128xf32, #tpu.memory_space<vmem>>, vector<64x64xf32>
    %c96 = arith.constant 96 : index
    %c0_3 = arith.constant 0 : index
    %3 = vector.load %arg0[%c96, %c0_3] : memref<312x128xf32, #tpu.memory_space<vmem>>, vector<64x128xf32>
    %c160 = arith.constant 160 : index
    %c0_4 = arith.constant 0 : index
    %4 = vector.load %arg0[%c160, %c0_4] : memref<312x128xf32, #tpu.memory_space<vmem>>, vector<1x32xf32>
    %c161 = arith.constant 161 : index
    %c0_5 = arith.constant 0 : index
    %5 = vector.load %arg0[%c161, %c0_5] : memref<312x128xf32, #tpu.memory_space<vmem>>, vector<1x32xf32>
    %c162 = arith.constant 162 : index
    %c0_6 = arith.constant 0 : index
    %6 = vector.load %arg0[%c162, %c0_6] : memref<312x128xf32, #tpu.memory_space<vmem>>, vector<1x32xf32>
    %c163 = arith.constant 163 : index
    %c0_7 = arith.constant 0 : index
    %7 = vector.load %arg0[%c163, %c0_7] : memref<312x128xf32, #tpu.memory_space<vmem>>, vector<1x32xf32>
    %c164 = arith.constant 164 : index
    %c0_8 = arith.constant 0 : index
    %8 = vector.load %arg0[%c164, %c0_8] : memref<312x128xf32, #tpu.memory_space<vmem>>, vector<1x32xf32>
    %c165 = arith.constant 165 : index
    %c0_9 = arith.constant 0 : index
    %9 = vector.load %arg0[%c165, %c0_9] : memref<312x128xf32, #tpu.memory_space<vmem>>, vector<1x128xf32>
    %c0_10 = arith.constant 0 : index
    %c0_11 = arith.constant 0 : index
    %10 = vector.load %arg1[%c0_10, %c0_11] : memref<592x128xbf16, #tpu.memory_space<vmem>>, vector<16x32xbf16>
    %c16_12 = arith.constant 16 : index
    %c0_13 = arith.constant 0 : index
    %11 = vector.load %arg1[%c16_12, %c0_13] : memref<592x128xbf16, #tpu.memory_space<vmem>>, vector<32x32xbf16>
    %c48 = arith.constant 48 : index
    %c0_14 = arith.constant 0 : index
    %12 = vector.load %arg1[%c48, %c0_14] : memref<592x128xbf16, #tpu.memory_space<vmem>>, vector<32x128xbf16>
    %13 = arith.truncf %0 : vector<16x16xf32> to vector<16x16xbf16>
    %cst = arith.constant dense<0.000000e+00> : vector<16x32xf32>
    %14 = tpu.matmul %13, %10, %cst {dimension_numbers = #tpu.dot_dimension_numbers<[1], [0], [0], [1], [0, 0, 1, 1], [], []>} : vector<16x16xbf16>, vector<16x32xbf16>, vector<16x32xf32> -> vector<16x32xf32>
    %15 = arith.addf %14, %1 : vector<16x32xf32>
    %cst_15 = arith.constant dense<0.000000e+00> : vector<16xf32>
    %16 = vector.multi_reduction <add>, %15, %cst_15 [1] : vector<16x32xf32> to vector<16xf32>
    %17 = vector.shape_cast %16 : vector<16xf32> to vector<16x1xf32>
    %cst_16 = arith.constant 3.200000e+01 : f32
    %18 = vector.broadcast %cst_16 : f32 to vector<16x1xf32>
    %19 = arith.divf %17, %18 : vector<16x1xf32>
    %20 = vector.broadcast %19 : vector<16x1xf32> to vector<16x32xf32>
    %21 = arith.subf %15, %20 : vector<16x32xf32>
    %22 = arith.mulf %21, %21 : vector<16x32xf32>
    %cst_17 = arith.constant dense<0.000000e+00> : vector<16xf32>
    %23 = vector.multi_reduction <add>, %22, %cst_17 [1] : vector<16x32xf32> to vector<16xf32>
    %24 = vector.shape_cast %23 : vector<16xf32> to vector<16x1xf32>
    %cst_18 = arith.constant 3.200000e+01 : f32
    %25 = vector.broadcast %cst_18 : f32 to vector<16x1xf32>
    %26 = arith.divf %24, %25 : vector<16x1xf32>
    %27 = vector.broadcast %19 : vector<16x1xf32> to vector<16x32xf32>
    %28 = arith.subf %15, %27 : vector<16x32xf32>
    %cst_19 = arith.constant 9.99999974E-6 : f32
    %29 = vector.broadcast %cst_19 : f32 to vector<16x1xf32>
    %30 = arith.addf %26, %29 : vector<16x1xf32>
    %31 = math.rsqrt %30 : vector<16x1xf32>
    %32 = vector.broadcast %31 : vector<16x1xf32> to vector<16x32xf32>
    %33 = arith.mulf %28, %32 : vector<16x32xf32>
    %34 = vector.broadcast %4 : vector<1x32xf32> to vector<16x32xf32>
    %35 = arith.mulf %33, %34 : vector<16x32xf32>
    %36 = vector.broadcast %5 : vector<1x32xf32> to vector<16x32xf32>
    %37 = arith.addf %35, %36 : vector<16x32xf32>
    %c168 = arith.constant 168 : index
    %c0_20 = arith.constant 0 : index
    %38 = vector.load %arg0[%c168, %c0_20] : memref<312x128xf32, #tpu.memory_space<vmem>>, vector<1x32xf32>
    %c169 = arith.constant 169 : index
    %c0_21 = arith.constant 0 : index
    %39 = vector.load %arg0[%c169, %c0_21] : memref<312x128xf32, #tpu.memory_space<vmem>>, vector<1x32xf32>
    %c170 = arith.constant 170 : index
    %c0_22 = arith.constant 0 : index
    %40 = vector.load %arg0[%c170, %c0_22] : memref<312x128xf32, #tpu.memory_space<vmem>>, vector<1x32xf32>
    %c171 = arith.constant 171 : index
    %c0_23 = arith.constant 0 : index
    %41 = vector.load %arg0[%c171, %c0_23] : memref<312x128xf32, #tpu.memory_space<vmem>>, vector<1x32xf32>
    %c172 = arith.constant 172 : index
    %c0_24 = arith.constant 0 : index
    %42 = vector.load %arg0[%c172, %c0_24] : memref<312x128xf32, #tpu.memory_space<vmem>>, vector<1x32xf32>
    %c173 = arith.constant 173 : index
    %c0_25 = arith.constant 0 : index
    %43 = vector.load %arg0[%c173, %c0_25] : memref<312x128xf32, #tpu.memory_space<vmem>>, vector<1x32xf32>
    %c174 = arith.constant 174 : index
    %c0_26 = arith.constant 0 : index
    %44 = vector.load %arg0[%c174, %c0_26] : memref<312x128xf32, #tpu.memory_space<vmem>>, vector<1x32xf32>
    %c176 = arith.constant 176 : index
    %c0_27 = arith.constant 0 : index
    %45 = vector.load %arg0[%c176, %c0_27] : memref<312x128xf32, #tpu.memory_space<vmem>>, vector<64x24xf32>
    %c80 = arith.constant 80 : index
    %c0_28 = arith.constant 0 : index
    %46 = vector.load %arg1[%c80, %c0_28] : memref<592x128xbf16, #tpu.memory_space<vmem>>, vector<128x24xbf16>
    %c208 = arith.constant 208 : index
    %c0_29 = arith.constant 0 : index
    %47 = vector.load %arg1[%c208, %c0_29] : memref<592x128xbf16, #tpu.memory_space<vmem>>, vector<64x32xbf16>
    %c272 = arith.constant 272 : index
    %c0_30 = arith.constant 0 : index
    %48 = vector.load %arg1[%c272, %c0_30] : memref<592x128xbf16, #tpu.memory_space<vmem>>, vector<32x32xbf16>
    %c304 = arith.constant 304 : index
    %c0_31 = arith.constant 0 : index
    %49 = vector.load %arg1[%c304, %c0_31] : memref<592x128xbf16, #tpu.memory_space<vmem>>, vector<32x32xbf16>
    %cst_32 = arith.constant dense<0.000000e+00> : vector<16xf32>
    %50 = vector.multi_reduction <add>, %37, %cst_32 [1] : vector<16x32xf32> to vector<16xf32>
    %51 = vector.shape_cast %50 : vector<16xf32> to vector<16x1xf32>
    %cst_33 = arith.constant 3.200000e+01 : f32
    %52 = vector.broadcast %cst_33 : f32 to vector<16x1xf32>
    %53 = arith.divf %51, %52 : vector<16x1xf32>
    %54 = vector.broadcast %53 : vector<16x1xf32> to vector<16x32xf32>
    %55 = arith.subf %37, %54 : vector<16x32xf32>
    %56 = arith.mulf %55, %55 : vector<16x32xf32>
    %cst_34 = arith.constant dense<0.000000e+00> : vector<16xf32>
    %57 = vector.multi_reduction <add>, %56, %cst_34 [1] : vector<16x32xf32> to vector<16xf32>
    %58 = vector.shape_cast %57 : vector<16xf32> to vector<16x1xf32>
    %cst_35 = arith.constant 3.200000e+01 : f32
    %59 = vector.broadcast %cst_35 : f32 to vector<16x1xf32>
    %60 = arith.divf %58, %59 : vector<16x1xf32>
    %61 = vector.broadcast %53 : vector<16x1xf32> to vector<16x32xf32>
    %62 = arith.subf %37, %61 : vector<16x32xf32>
    %cst_36 = arith.constant 9.99999974E-6 : f32
    %63 = vector.broadcast %cst_36 : f32 to vector<16x1xf32>
    %64 = arith.addf %60, %63 : vector<16x1xf32>
    %65 = math.rsqrt %64 : vector<16x1xf32>
    %66 = vector.broadcast %65 : vector<16x1xf32> to vector<16x32xf32>
    %67 = arith.mulf %62, %66 : vector<16x32xf32>
    %68 = vector.broadcast %38 : vector<1x32xf32> to vector<16x32xf32>
    %69 = arith.mulf %67, %68 : vector<16x32xf32>
    %70 = vector.broadcast %39 : vector<1x32xf32> to vector<16x32xf32>
    %71 = arith.addf %69, %70 : vector<16x32xf32>
    %72 = tpu.concatenate %71, %71, %71, %71 in 0 : vector<16x32xf32>, vector<16x32xf32>, vector<16x32xf32>, vector<16x32xf32> -> vector<64x32xf32>
    %73 = tpu.concatenate %72, %72, %72, %72 in 1 : vector<64x32xf32>, vector<64x32xf32>, vector<64x32xf32>, vector<64x32xf32> -> vector<64x128xf32>
    %74 = arith.mulf %3, %73 : vector<64x128xf32>
    %75 = arith.truncf %74 : vector<64x128xf32> to vector<64x128xbf16>
    %cst_37 = arith.constant dense<0.000000e+00> : vector<64x24xf32>
    %76 = tpu.matmul %75, %46, %cst_37 {dimension_numbers = #tpu.dot_dimension_numbers<[1], [0], [0], [1], [0, 0, 1, 1], [], []>} : vector<64x128xbf16>, vector<128x24xbf16>, vector<64x24xf32> -> vector<64x24xf32>
    %77 = arith.addf %76, %45 : vector<64x24xf32>
    %78 = vector.extract_strided_slice %77 {offsets = [0, 0], sizes = [64, 8], strides = [1, 1]} : vector<64x24xf32> to vector<64x8xf32>
    %79 = arith.truncf %78 : vector<64x8xf32> to vector<64x8xbf16>
    %80 = vector.extract_strided_slice %77 {offsets = [0, 8], sizes = [64, 8], strides = [1, 1]} : vector<64x24xf32> to vector<64x8xf32>
    %81 = arith.truncf %80 : vector<64x8xf32> to vector<64x8xbf16>
    %82 = vector.extract_strided_slice %77 {offsets = [0, 16], sizes = [64, 8], strides = [1, 1]} : vector<64x24xf32> to vector<64x8xf32>
    %83 = arith.truncf %82 : vector<64x8xf32> to vector<64x8xbf16>
    %cst_38 = arith.constant dense<0.000000e+00> : vector<64x64xf32>
    %84 = tpu.matmul %79, %81, %cst_38 {dimension_numbers = #tpu.dot_dimension_numbers<[1], [1], [0], [0], [0, 0, 1, 0], [], []>} : vector<64x8xbf16>, vector<64x8xbf16>, vector<64x64xf32> -> vector<64x64xf32>
    %85 = arith.addf %84, %2 : vector<64x64xf32>
    %cst_39 = arith.constant dense<0xFF800000> : vector<64xf32>
    %86 = vector.multi_reduction <maximumf>, %85, %cst_39 [1] : vector<64x64xf32> to vector<64xf32>
    %87 = vector.shape_cast %86 : vector<64xf32> to vector<64x1xf32>
    %88 = vector.broadcast %87 : vector<64x1xf32> to vector<64x64xf32>
    %89 = arith.subf %85, %88 : vector<64x64xf32>
    %90 = math.exp %89 : vector<64x64xf32>
    %cst_40 = arith.constant dense<0.000000e+00> : vector<64xf32>
    %91 = vector.multi_reduction <add>, %90, %cst_40 [1] : vector<64x64xf32> to vector<64xf32>
    %92 = vector.shape_cast %91 : vector<64xf32> to vector<64x1xf32>
    %93 = tpu.reciprocal %92 {approx = true} : vector<64x1xf32> -> vector<64x1xf32>
    %94 = vector.broadcast %93 : vector<64x1xf32> to vector<64x64xf32>
    %95 = arith.mulf %90, %94 : vector<64x64xf32>
    %96 = arith.truncf %95 : vector<64x64xf32> to vector<64x64xbf16>
    %cst_41 = arith.constant dense<0.000000e+00> : vector<64x8xf32>
    %97 = tpu.matmul %96, %83, %cst_41 {dimension_numbers = #tpu.dot_dimension_numbers<[1], [0], [0], [1], [0, 0, 1, 1], [], []>} : vector<64x64xbf16>, vector<64x8xbf16>, vector<64x8xf32> -> vector<64x8xf32>
    %cst_42 = arith.constant 0.000000e+00 : f32
    %98 = vector.broadcast %cst_42 : f32 to vector<64x8xf32>
    %99 = tpu.concatenate %97, %98 in 1 : vector<64x8xf32>, vector<64x8xf32> -> vector<64x16xf32>
    %100 = arith.truncf %99 : vector<64x16xf32> to vector<64x16xbf16>
    %101 = vector.extract_strided_slice %100 {offsets = [0, 0], sizes = [16, 16], strides = [1, 1]} : vector<64x16xbf16> to vector<16x16xbf16>
    %102 = vector.extract_strided_slice %47 {offsets = [0, 0], sizes = [16, 32], strides = [1, 1]} : vector<64x32xbf16> to vector<16x32xbf16>
    %cst_43 = arith.constant dense<0.000000e+00> : vector<16x32xf32>
    %103 = tpu.matmul %101, %102, %cst_43 {dimension_numbers = #tpu.dot_dimension_numbers<[1], [0], [0], [1], [0, 0, 1, 1], [], []>} : vector<16x16xbf16>, vector<16x32xbf16>, vector<16x32xf32> -> vector<16x32xf32>
    %104 = vector.extract_strided_slice %100 {offsets = [16, 0], sizes = [16, 16], strides = [1, 1]} : vector<64x16xbf16> to vector<16x16xbf16>
    %105 = vector.extract_strided_slice %47 {offsets = [16, 0], sizes = [16, 32], strides = [1, 1]} : vector<64x32xbf16> to vector<16x32xbf16>
    %cst_44 = arith.constant dense<0.000000e+00> : vector<16x32xf32>
    %106 = tpu.matmul %104, %105, %cst_44 {dimension_numbers = #tpu.dot_dimension_numbers<[1], [0], [0], [1], [0, 0, 1, 1], [], []>} : vector<16x16xbf16>, vector<16x32xbf16>, vector<16x32xf32> -> vector<16x32xf32>
    %107 = arith.addf %103, %106 : vector<16x32xf32>
    %108 = vector.extract_strided_slice %100 {offsets = [32, 0], sizes = [16, 16], strides = [1, 1]} : vector<64x16xbf16> to vector<16x16xbf16>
    %109 = vector.extract_strided_slice %47 {offsets = [32, 0], sizes = [16, 32], strides = [1, 1]} : vector<64x32xbf16> to vector<16x32xbf16>
    %cst_45 = arith.constant dense<0.000000e+00> : vector<16x32xf32>
    %110 = tpu.matmul %108, %109, %cst_45 {dimension_numbers = #tpu.dot_dimension_numbers<[1], [0], [0], [1], [0, 0, 1, 1], [], []>} : vector<16x16xbf16>, vector<16x32xbf16>, vector<16x32xf32> -> vector<16x32xf32>
    %111 = arith.addf %107, %110 : vector<16x32xf32>
    %112 = vector.extract_strided_slice %100 {offsets = [48, 0], sizes = [16, 16], strides = [1, 1]} : vector<64x16xbf16> to vector<16x16xbf16>
    %113 = vector.extract_strided_slice %47 {offsets = [48, 0], sizes = [16, 32], strides = [1, 1]} : vector<64x32xbf16> to vector<16x32xbf16>
    %cst_46 = arith.constant dense<0.000000e+00> : vector<16x32xf32>
    %114 = tpu.matmul %112, %113, %cst_46 {dimension_numbers = #tpu.dot_dimension_numbers<[1], [0], [0], [1], [0, 0, 1, 1], [], []>} : vector<16x16xbf16>, vector<16x32xbf16>, vector<16x32xf32> -> vector<16x32xf32>
    %115 = arith.addf %111, %114 : vector<16x32xf32>
    %116 = arith.addf %37, %115 : vector<16x32xf32>
    %117 = vector.broadcast %40 : vector<1x32xf32> to vector<16x32xf32>
    %118 = arith.addf %116, %117 : vector<16x32xf32>
    %cst_47 = arith.constant dense<0.000000e+00> : vector<16xf32>
    %119 = vector.multi_reduction <add>, %118, %cst_47 [1] : vector<16x32xf32> to vector<16xf32>
    %120 = vector.shape_cast %119 : vector<16xf32> to vector<16x1xf32>
    %cst_48 = arith.constant 3.200000e+01 : f32
    %121 = vector.broadcast %cst_48 : f32 to vector<16x1xf32>
    %122 = arith.divf %120, %121 : vector<16x1xf32>
    %123 = vector.broadcast %122 : vector<16x1xf32> to vector<16x32xf32>
    %124 = arith.subf %118, %123 : vector<16x32xf32>
    %125 = arith.mulf %124, %124 : vector<16x32xf32>
    %cst_49 = arith.constant dense<0.000000e+00> : vector<16xf32>
    %126 = vector.multi_reduction <add>, %125, %cst_49 [1] : vector<16x32xf32> to vector<16xf32>
    %127 = vector.shape_cast %126 : vector<16xf32> to vector<16x1xf32>
    %cst_50 = arith.constant 3.200000e+01 : f32
    %128 = vector.broadcast %cst_50 : f32 to vector<16x1xf32>
    %129 = arith.divf %127, %128 : vector<16x1xf32>
    %130 = vector.broadcast %122 : vector<16x1xf32> to vector<16x32xf32>
    %131 = arith.subf %118, %130 : vector<16x32xf32>
    %cst_51 = arith.constant 9.99999974E-6 : f32
    %132 = vector.broadcast %cst_51 : f32 to vector<16x1xf32>
    %133 = arith.addf %129, %132 : vector<16x1xf32>
    %134 = math.rsqrt %133 : vector<16x1xf32>
    %135 = vector.broadcast %134 : vector<16x1xf32> to vector<16x32xf32>
    %136 = arith.mulf %131, %135 : vector<16x32xf32>
    %137 = vector.broadcast %41 : vector<1x32xf32> to vector<16x32xf32>
    %138 = arith.mulf %136, %137 : vector<16x32xf32>
    %139 = vector.broadcast %42 : vector<1x32xf32> to vector<16x32xf32>
    %140 = arith.addf %138, %139 : vector<16x32xf32>
    %141 = arith.truncf %140 : vector<16x32xf32> to vector<16x32xbf16>
    %cst_52 = arith.constant dense<0.000000e+00> : vector<16x32xf32>
    %142 = tpu.matmul %141, %48, %cst_52 {dimension_numbers = #tpu.dot_dimension_numbers<[1], [0], [0], [1], [0, 0, 1, 1], [], []>} : vector<16x32xbf16>, vector<32x32xbf16>, vector<16x32xf32> -> vector<16x32xf32>
    %143 = vector.broadcast %43 : vector<1x32xf32> to vector<16x32xf32>
    %144 = arith.addf %142, %143 : vector<16x32xf32>
    %cst_53 = arith.constant 5.000000e-01 : f32
    %145 = vector.broadcast %cst_53 : f32 to vector<16x32xf32>
    %146 = arith.mulf %145, %144 : vector<16x32xf32>
    %147 = arith.mulf %144, %144 : vector<16x32xf32>
    %148 = arith.mulf %147, %144 : vector<16x32xf32>
    %cst_54 = arith.constant 4.471500e-02 : f32
    %149 = vector.broadcast %cst_54 : f32 to vector<16x32xf32>
    %150 = arith.mulf %149, %148 : vector<16x32xf32>
    %151 = arith.addf %144, %150 : vector<16x32xf32>
    %cst_55 = arith.constant 0.797884583 : f32
    %152 = vector.broadcast %cst_55 : f32 to vector<16x32xf32>
    %153 = arith.mulf %152, %151 : vector<16x32xf32>
    %154 = math.tanh %153 : vector<16x32xf32>
    %cst_56 = arith.constant 1.000000e+00 : f32
    %155 = vector.broadcast %cst_56 : f32 to vector<16x32xf32>
    %156 = arith.addf %155, %154 : vector<16x32xf32>
    %157 = arith.mulf %146, %156 : vector<16x32xf32>
    %158 = arith.truncf %157 : vector<16x32xf32> to vector<16x32xbf16>
    %cst_57 = arith.constant dense<0.000000e+00> : vector<16x32xf32>
    %159 = tpu.matmul %158, %49, %cst_57 {dimension_numbers = #tpu.dot_dimension_numbers<[1], [0], [0], [1], [0, 0, 1, 1], [], []>} : vector<16x32xbf16>, vector<32x32xbf16>, vector<16x32xf32> -> vector<16x32xf32>
    %160 = vector.broadcast %44 : vector<1x32xf32> to vector<16x32xf32>
    %161 = arith.addf %159, %160 : vector<16x32xf32>
    %162 = arith.addf %118, %161 : vector<16x32xf32>
    %c240 = arith.constant 240 : index
    %c0_58 = arith.constant 0 : index
    %163 = vector.load %arg0[%c240, %c0_58] : memref<312x128xf32, #tpu.memory_space<vmem>>, vector<1x32xf32>
    %c241 = arith.constant 241 : index
    %c0_59 = arith.constant 0 : index
    %164 = vector.load %arg0[%c241, %c0_59] : memref<312x128xf32, #tpu.memory_space<vmem>>, vector<1x32xf32>
    %c242 = arith.constant 242 : index
    %c0_60 = arith.constant 0 : index
    %165 = vector.load %arg0[%c242, %c0_60] : memref<312x128xf32, #tpu.memory_space<vmem>>, vector<1x32xf32>
    %c243 = arith.constant 243 : index
    %c0_61 = arith.constant 0 : index
    %166 = vector.load %arg0[%c243, %c0_61] : memref<312x128xf32, #tpu.memory_space<vmem>>, vector<1x32xf32>
    %c244 = arith.constant 244 : index
    %c0_62 = arith.constant 0 : index
    %167 = vector.load %arg0[%c244, %c0_62] : memref<312x128xf32, #tpu.memory_space<vmem>>, vector<1x32xf32>
    %c245 = arith.constant 245 : index
    %c0_63 = arith.constant 0 : index
    %168 = vector.load %arg0[%c245, %c0_63] : memref<312x128xf32, #tpu.memory_space<vmem>>, vector<1x32xf32>
    %c246 = arith.constant 246 : index
    %c0_64 = arith.constant 0 : index
    %169 = vector.load %arg0[%c246, %c0_64] : memref<312x128xf32, #tpu.memory_space<vmem>>, vector<1x32xf32>
    %c248 = arith.constant 248 : index
    %c0_65 = arith.constant 0 : index
    %170 = vector.load %arg0[%c248, %c0_65] : memref<312x128xf32, #tpu.memory_space<vmem>>, vector<64x24xf32>
    %c336 = arith.constant 336 : index
    %c0_66 = arith.constant 0 : index
    %171 = vector.load %arg1[%c336, %c0_66] : memref<592x128xbf16, #tpu.memory_space<vmem>>, vector<128x24xbf16>
    %c464 = arith.constant 464 : index
    %c0_67 = arith.constant 0 : index
    %172 = vector.load %arg1[%c464, %c0_67] : memref<592x128xbf16, #tpu.memory_space<vmem>>, vector<64x32xbf16>
    %c528 = arith.constant 528 : index
    %c0_68 = arith.constant 0 : index
    %173 = vector.load %arg1[%c528, %c0_68] : memref<592x128xbf16, #tpu.memory_space<vmem>>, vector<32x32xbf16>
    %c560 = arith.constant 560 : index
    %c0_69 = arith.constant 0 : index
    %174 = vector.load %arg1[%c560, %c0_69] : memref<592x128xbf16, #tpu.memory_space<vmem>>, vector<32x32xbf16>
    %cst_70 = arith.constant dense<0.000000e+00> : vector<16xf32>
    %175 = vector.multi_reduction <add>, %162, %cst_70 [1] : vector<16x32xf32> to vector<16xf32>
    %176 = vector.shape_cast %175 : vector<16xf32> to vector<16x1xf32>
    %cst_71 = arith.constant 3.200000e+01 : f32
    %177 = vector.broadcast %cst_71 : f32 to vector<16x1xf32>
    %178 = arith.divf %176, %177 : vector<16x1xf32>
    %179 = vector.broadcast %178 : vector<16x1xf32> to vector<16x32xf32>
    %180 = arith.subf %162, %179 : vector<16x32xf32>
    %181 = arith.mulf %180, %180 : vector<16x32xf32>
    %cst_72 = arith.constant dense<0.000000e+00> : vector<16xf32>
    %182 = vector.multi_reduction <add>, %181, %cst_72 [1] : vector<16x32xf32> to vector<16xf32>
    %183 = vector.shape_cast %182 : vector<16xf32> to vector<16x1xf32>
    %cst_73 = arith.constant 3.200000e+01 : f32
    %184 = vector.broadcast %cst_73 : f32 to vector<16x1xf32>
    %185 = arith.divf %183, %184 : vector<16x1xf32>
    %186 = vector.broadcast %178 : vector<16x1xf32> to vector<16x32xf32>
    %187 = arith.subf %162, %186 : vector<16x32xf32>
    %cst_74 = arith.constant 9.99999974E-6 : f32
    %188 = vector.broadcast %cst_74 : f32 to vector<16x1xf32>
    %189 = arith.addf %185, %188 : vector<16x1xf32>
    %190 = math.rsqrt %189 : vector<16x1xf32>
    %191 = vector.broadcast %190 : vector<16x1xf32> to vector<16x32xf32>
    %192 = arith.mulf %187, %191 : vector<16x32xf32>
    %193 = vector.broadcast %163 : vector<1x32xf32> to vector<16x32xf32>
    %194 = arith.mulf %192, %193 : vector<16x32xf32>
    %195 = vector.broadcast %164 : vector<1x32xf32> to vector<16x32xf32>
    %196 = arith.addf %194, %195 : vector<16x32xf32>
    %197 = tpu.concatenate %196, %196, %196, %196 in 0 : vector<16x32xf32>, vector<16x32xf32>, vector<16x32xf32>, vector<16x32xf32> -> vector<64x32xf32>
    %198 = tpu.concatenate %197, %197, %197, %197 in 1 : vector<64x32xf32>, vector<64x32xf32>, vector<64x32xf32>, vector<64x32xf32> -> vector<64x128xf32>
    %199 = arith.mulf %3, %198 : vector<64x128xf32>
    %200 = arith.truncf %199 : vector<64x128xf32> to vector<64x128xbf16>
    %cst_75 = arith.constant dense<0.000000e+00> : vector<64x24xf32>
    %201 = tpu.matmul %200, %171, %cst_75 {dimension_numbers = #tpu.dot_dimension_numbers<[1], [0], [0], [1], [0, 0, 1, 1], [], []>} : vector<64x128xbf16>, vector<128x24xbf16>, vector<64x24xf32> -> vector<64x24xf32>
    %202 = arith.addf %201, %170 : vector<64x24xf32>
    %203 = vector.extract_strided_slice %202 {offsets = [0, 0], sizes = [64, 8], strides = [1, 1]} : vector<64x24xf32> to vector<64x8xf32>
    %204 = arith.truncf %203 : vector<64x8xf32> to vector<64x8xbf16>
    %205 = vector.extract_strided_slice %202 {offsets = [0, 8], sizes = [64, 8], strides = [1, 1]} : vector<64x24xf32> to vector<64x8xf32>
    %206 = arith.truncf %205 : vector<64x8xf32> to vector<64x8xbf16>
    %207 = vector.extract_strided_slice %202 {offsets = [0, 16], sizes = [64, 8], strides = [1, 1]} : vector<64x24xf32> to vector<64x8xf32>
    %208 = arith.truncf %207 : vector<64x8xf32> to vector<64x8xbf16>
    %cst_76 = arith.constant dense<0.000000e+00> : vector<64x64xf32>
    %209 = tpu.matmul %204, %206, %cst_76 {dimension_numbers = #tpu.dot_dimension_numbers<[1], [1], [0], [0], [0, 0, 1, 0], [], []>} : vector<64x8xbf16>, vector<64x8xbf16>, vector<64x64xf32> -> vector<64x64xf32>
    %210 = arith.addf %209, %2 : vector<64x64xf32>
    %cst_77 = arith.constant dense<0xFF800000> : vector<64xf32>
    %211 = vector.multi_reduction <maximumf>, %210, %cst_77 [1] : vector<64x64xf32> to vector<64xf32>
    %212 = vector.shape_cast %211 : vector<64xf32> to vector<64x1xf32>
    %213 = vector.broadcast %212 : vector<64x1xf32> to vector<64x64xf32>
    %214 = arith.subf %210, %213 : vector<64x64xf32>
    %215 = math.exp %214 : vector<64x64xf32>
    %cst_78 = arith.constant dense<0.000000e+00> : vector<64xf32>
    %216 = vector.multi_reduction <add>, %215, %cst_78 [1] : vector<64x64xf32> to vector<64xf32>
    %217 = vector.shape_cast %216 : vector<64xf32> to vector<64x1xf32>
    %218 = tpu.reciprocal %217 {approx = true} : vector<64x1xf32> -> vector<64x1xf32>
    %219 = vector.broadcast %218 : vector<64x1xf32> to vector<64x64xf32>
    %220 = arith.mulf %215, %219 : vector<64x64xf32>
    %221 = arith.truncf %220 : vector<64x64xf32> to vector<64x64xbf16>
    %cst_79 = arith.constant dense<0.000000e+00> : vector<64x8xf32>
    %222 = tpu.matmul %221, %208, %cst_79 {dimension_numbers = #tpu.dot_dimension_numbers<[1], [0], [0], [1], [0, 0, 1, 1], [], []>} : vector<64x64xbf16>, vector<64x8xbf16>, vector<64x8xf32> -> vector<64x8xf32>
    %cst_80 = arith.constant 0.000000e+00 : f32
    %223 = vector.broadcast %cst_80 : f32 to vector<64x8xf32>
    %224 = tpu.concatenate %222, %223 in 1 : vector<64x8xf32>, vector<64x8xf32> -> vector<64x16xf32>
    %225 = arith.truncf %224 : vector<64x16xf32> to vector<64x16xbf16>
    %226 = vector.extract_strided_slice %225 {offsets = [0, 0], sizes = [16, 16], strides = [1, 1]} : vector<64x16xbf16> to vector<16x16xbf16>
    %227 = vector.extract_strided_slice %172 {offsets = [0, 0], sizes = [16, 32], strides = [1, 1]} : vector<64x32xbf16> to vector<16x32xbf16>
    %cst_81 = arith.constant dense<0.000000e+00> : vector<16x32xf32>
    %228 = tpu.matmul %226, %227, %cst_81 {dimension_numbers = #tpu.dot_dimension_numbers<[1], [0], [0], [1], [0, 0, 1, 1], [], []>} : vector<16x16xbf16>, vector<16x32xbf16>, vector<16x32xf32> -> vector<16x32xf32>
    %229 = vector.extract_strided_slice %225 {offsets = [16, 0], sizes = [16, 16], strides = [1, 1]} : vector<64x16xbf16> to vector<16x16xbf16>
    %230 = vector.extract_strided_slice %172 {offsets = [16, 0], sizes = [16, 32], strides = [1, 1]} : vector<64x32xbf16> to vector<16x32xbf16>
    %cst_82 = arith.constant dense<0.000000e+00> : vector<16x32xf32>
    %231 = tpu.matmul %229, %230, %cst_82 {dimension_numbers = #tpu.dot_dimension_numbers<[1], [0], [0], [1], [0, 0, 1, 1], [], []>} : vector<16x16xbf16>, vector<16x32xbf16>, vector<16x32xf32> -> vector<16x32xf32>
    %232 = arith.addf %228, %231 : vector<16x32xf32>
    %233 = vector.extract_strided_slice %225 {offsets = [32, 0], sizes = [16, 16], strides = [1, 1]} : vector<64x16xbf16> to vector<16x16xbf16>
    %234 = vector.extract_strided_slice %172 {offsets = [32, 0], sizes = [16, 32], strides = [1, 1]} : vector<64x32xbf16> to vector<16x32xbf16>
    %cst_83 = arith.constant dense<0.000000e+00> : vector<16x32xf32>
    %235 = tpu.matmul %233, %234, %cst_83 {dimension_numbers = #tpu.dot_dimension_numbers<[1], [0], [0], [1], [0, 0, 1, 1], [], []>} : vector<16x16xbf16>, vector<16x32xbf16>, vector<16x32xf32> -> vector<16x32xf32>
    %236 = arith.addf %232, %235 : vector<16x32xf32>
    %237 = vector.extract_strided_slice %225 {offsets = [48, 0], sizes = [16, 16], strides = [1, 1]} : vector<64x16xbf16> to vector<16x16xbf16>
    %238 = vector.extract_strided_slice %172 {offsets = [48, 0], sizes = [16, 32], strides = [1, 1]} : vector<64x32xbf16> to vector<16x32xbf16>
    %cst_84 = arith.constant dense<0.000000e+00> : vector<16x32xf32>
    %239 = tpu.matmul %237, %238, %cst_84 {dimension_numbers = #tpu.dot_dimension_numbers<[1], [0], [0], [1], [0, 0, 1, 1], [], []>} : vector<16x16xbf16>, vector<16x32xbf16>, vector<16x32xf32> -> vector<16x32xf32>
    %240 = arith.addf %236, %239 : vector<16x32xf32>
    %241 = arith.addf %162, %240 : vector<16x32xf32>
    %242 = vector.broadcast %165 : vector<1x32xf32> to vector<16x32xf32>
    %243 = arith.addf %241, %242 : vector<16x32xf32>
    %cst_85 = arith.constant dense<0.000000e+00> : vector<16xf32>
    %244 = vector.multi_reduction <add>, %243, %cst_85 [1] : vector<16x32xf32> to vector<16xf32>
    %245 = vector.shape_cast %244 : vector<16xf32> to vector<16x1xf32>
    %cst_86 = arith.constant 3.200000e+01 : f32
    %246 = vector.broadcast %cst_86 : f32 to vector<16x1xf32>
    %247 = arith.divf %245, %246 : vector<16x1xf32>
    %248 = vector.broadcast %247 : vector<16x1xf32> to vector<16x32xf32>
    %249 = arith.subf %243, %248 : vector<16x32xf32>
    %250 = arith.mulf %249, %249 : vector<16x32xf32>
    %cst_87 = arith.constant dense<0.000000e+00> : vector<16xf32>
    %251 = vector.multi_reduction <add>, %250, %cst_87 [1] : vector<16x32xf32> to vector<16xf32>
    %252 = vector.shape_cast %251 : vector<16xf32> to vector<16x1xf32>
    %cst_88 = arith.constant 3.200000e+01 : f32
    %253 = vector.broadcast %cst_88 : f32 to vector<16x1xf32>
    %254 = arith.divf %252, %253 : vector<16x1xf32>
    %255 = vector.broadcast %247 : vector<16x1xf32> to vector<16x32xf32>
    %256 = arith.subf %243, %255 : vector<16x32xf32>
    %cst_89 = arith.constant 9.99999974E-6 : f32
    %257 = vector.broadcast %cst_89 : f32 to vector<16x1xf32>
    %258 = arith.addf %254, %257 : vector<16x1xf32>
    %259 = math.rsqrt %258 : vector<16x1xf32>
    %260 = vector.broadcast %259 : vector<16x1xf32> to vector<16x32xf32>
    %261 = arith.mulf %256, %260 : vector<16x32xf32>
    %262 = vector.broadcast %166 : vector<1x32xf32> to vector<16x32xf32>
    %263 = arith.mulf %261, %262 : vector<16x32xf32>
    %264 = vector.broadcast %167 : vector<1x32xf32> to vector<16x32xf32>
    %265 = arith.addf %263, %264 : vector<16x32xf32>
    %266 = arith.truncf %265 : vector<16x32xf32> to vector<16x32xbf16>
    %cst_90 = arith.constant dense<0.000000e+00> : vector<16x32xf32>
    %267 = tpu.matmul %266, %173, %cst_90 {dimension_numbers = #tpu.dot_dimension_numbers<[1], [0], [0], [1], [0, 0, 1, 1], [], []>} : vector<16x32xbf16>, vector<32x32xbf16>, vector<16x32xf32> -> vector<16x32xf32>
    %268 = vector.broadcast %168 : vector<1x32xf32> to vector<16x32xf32>
    %269 = arith.addf %267, %268 : vector<16x32xf32>
    %cst_91 = arith.constant 5.000000e-01 : f32
    %270 = vector.broadcast %cst_91 : f32 to vector<16x32xf32>
    %271 = arith.mulf %270, %269 : vector<16x32xf32>
    %272 = arith.mulf %269, %269 : vector<16x32xf32>
    %273 = arith.mulf %272, %269 : vector<16x32xf32>
    %cst_92 = arith.constant 4.471500e-02 : f32
    %274 = vector.broadcast %cst_92 : f32 to vector<16x32xf32>
    %275 = arith.mulf %274, %273 : vector<16x32xf32>
    %276 = arith.addf %269, %275 : vector<16x32xf32>
    %cst_93 = arith.constant 0.797884583 : f32
    %277 = vector.broadcast %cst_93 : f32 to vector<16x32xf32>
    %278 = arith.mulf %277, %276 : vector<16x32xf32>
    %279 = math.tanh %278 : vector<16x32xf32>
    %cst_94 = arith.constant 1.000000e+00 : f32
    %280 = vector.broadcast %cst_94 : f32 to vector<16x32xf32>
    %281 = arith.addf %280, %279 : vector<16x32xf32>
    %282 = arith.mulf %271, %281 : vector<16x32xf32>
    %283 = arith.truncf %282 : vector<16x32xf32> to vector<16x32xbf16>
    %cst_95 = arith.constant dense<0.000000e+00> : vector<16x32xf32>
    %284 = tpu.matmul %283, %174, %cst_95 {dimension_numbers = #tpu.dot_dimension_numbers<[1], [0], [0], [1], [0, 0, 1, 1], [], []>} : vector<16x32xbf16>, vector<32x32xbf16>, vector<16x32xf32> -> vector<16x32xf32>
    %285 = vector.broadcast %169 : vector<1x32xf32> to vector<16x32xf32>
    %286 = arith.addf %284, %285 : vector<16x32xf32>
    %287 = arith.addf %243, %286 : vector<16x32xf32>
    %288 = vector.extract_strided_slice %287 {offsets = [0, 0], sizes = [8, 32], strides = [1, 1]} : vector<16x32xf32> to vector<8x32xf32>
    %289 = arith.truncf %288 : vector<8x32xf32> to vector<8x32xbf16>
    %cst_96 = arith.constant dense<0.000000e+00> : vector<8x32xf32>
    %290 = tpu.matmul %289, %11, %cst_96 {dimension_numbers = #tpu.dot_dimension_numbers<[1], [0], [0], [1], [0, 0, 1, 1], [], []>} : vector<8x32xbf16>, vector<32x32xbf16>, vector<8x32xf32> -> vector<8x32xf32>
    %291 = vector.broadcast %6 : vector<1x32xf32> to vector<8x32xf32>
    %292 = arith.addf %290, %291 : vector<8x32xf32>
    %cst_97 = arith.constant 5.000000e-01 : f32
    %293 = vector.broadcast %cst_97 : f32 to vector<8x32xf32>
    %294 = arith.mulf %293, %292 : vector<8x32xf32>
    %295 = arith.mulf %292, %292 : vector<8x32xf32>
    %296 = arith.mulf %295, %292 : vector<8x32xf32>
    %cst_98 = arith.constant 4.471500e-02 : f32
    %297 = vector.broadcast %cst_98 : f32 to vector<8x32xf32>
    %298 = arith.mulf %297, %296 : vector<8x32xf32>
    %299 = arith.addf %292, %298 : vector<8x32xf32>
    %cst_99 = arith.constant 0.797884583 : f32
    %300 = vector.broadcast %cst_99 : f32 to vector<8x32xf32>
    %301 = arith.mulf %300, %299 : vector<8x32xf32>
    %302 = math.tanh %301 : vector<8x32xf32>
    %cst_100 = arith.constant 1.000000e+00 : f32
    %303 = vector.broadcast %cst_100 : f32 to vector<8x32xf32>
    %304 = arith.addf %303, %302 : vector<8x32xf32>
    %305 = arith.mulf %294, %304 : vector<8x32xf32>
    %cst_101 = arith.constant dense<0.000000e+00> : vector<8xf32>
    %306 = vector.multi_reduction <add>, %305, %cst_101 [1] : vector<8x32xf32> to vector<8xf32>
    %307 = vector.shape_cast %306 : vector<8xf32> to vector<8x1xf32>
    %cst_102 = arith.constant 3.200000e+01 : f32
    %308 = vector.broadcast %cst_102 : f32 to vector<8x1xf32>
    %309 = arith.divf %307, %308 : vector<8x1xf32>
    %310 = vector.broadcast %309 : vector<8x1xf32> to vector<8x32xf32>
    %311 = arith.subf %305, %310 : vector<8x32xf32>
    %312 = arith.mulf %311, %311 : vector<8x32xf32>
    %cst_103 = arith.constant dense<0.000000e+00> : vector<8xf32>
    %313 = vector.multi_reduction <add>, %312, %cst_103 [1] : vector<8x32xf32> to vector<8xf32>
    %314 = vector.shape_cast %313 : vector<8xf32> to vector<8x1xf32>
    %cst_104 = arith.constant 3.200000e+01 : f32
    %315 = vector.broadcast %cst_104 : f32 to vector<8x1xf32>
    %316 = arith.divf %314, %315 : vector<8x1xf32>
    %317 = vector.broadcast %309 : vector<8x1xf32> to vector<8x32xf32>
    %318 = arith.subf %305, %317 : vector<8x32xf32>
    %cst_105 = arith.constant 9.99999974E-6 : f32
    %319 = vector.broadcast %cst_105 : f32 to vector<8x1xf32>
    %320 = arith.addf %316, %319 : vector<8x1xf32>
    %321 = math.rsqrt %320 : vector<8x1xf32>
    %322 = vector.broadcast %321 : vector<8x1xf32> to vector<8x32xf32>
    %323 = arith.mulf %318, %322 : vector<8x32xf32>
    %324 = vector.broadcast %7 : vector<1x32xf32> to vector<8x32xf32>
    %325 = arith.mulf %323, %324 : vector<8x32xf32>
    %326 = vector.broadcast %8 : vector<1x32xf32> to vector<8x32xf32>
    %327 = arith.addf %325, %326 : vector<8x32xf32>
    %328 = arith.truncf %327 : vector<8x32xf32> to vector<8x32xbf16>
    %cst_106 = arith.constant dense<0.000000e+00> : vector<8x128xf32>
    %329 = tpu.matmul %328, %12, %cst_106 {dimension_numbers = #tpu.dot_dimension_numbers<[1], [0], [0], [1], [0, 0, 1, 1], [], []>} : vector<8x32xbf16>, vector<32x128xbf16>, vector<8x128xf32> -> vector<8x128xf32>
    %330 = vector.broadcast %9 : vector<1x128xf32> to vector<8x128xf32>
    %331 = arith.addf %329, %330 : vector<8x128xf32>
    %c0_107 = arith.constant 0 : index
    %c0_108 = arith.constant 0 : index
    %332 = vector.load %arg2[%c0_107, %c0_108] : memref<8x128xf32, #tpu.memory_space<vmem>>, vector<8x128xf32>
    tpu.vector_store %arg2[%c0_107, %c0_108], %331 {strides = array<i32>} : memref<8x128xf32, #tpu.memory_space<vmem>>, vector<8x128xf32>,
    return
  }
}

</mosaic_0001>

<bundles_post_ra>
// kernel: tile.8
= control target key start
LH: loop header
LB: loop body
LE: loop exit
PB: predicated region body
PF: predicated region fallthrough
CT: control target
= control target key end

     0   :  { %s22_s0 = inlined_call_operand.vmem [shape: s32[7], index: 0, kind: input, shape index: {}]   ;;  %s23_s1 = inlined_call_operand.vmem [shape: s32[2,7], index: 1, kind: output, shape index: {}]  }
   0x1   :  { %v4_v0 = vld [vmem:[%s22_s0] ss:$0 sm:$0xff] }
   0x2   :  { %5 = vst [vmem:[%s23_s1] sm:$0x3] %v4_v0 }

// kernel: graphormer_forward.1
= control target key start
LH: loop header
LB: loop body
LE: loop exit
PB: predicated region body
PF: predicated region fallthrough
CT: control target
= control target key end

     0   :  { %v2692_v0 = vmov 0.0   ;;  %vm2693_vm0 = vmmov 0   ;;  %vm55_vm1 = vcmask 130048   ;;  %vm100_vm2 = vcmask 261120   ;;  %s2694_s15 = smov 64   ;;  %s2695_s16 = smov 32   ;;  %s3387_s1 = inlined_call_operand.vmem [shape: bf16[592,128], index: 1, kind: input, shape index: {}]   ;;  %s3388_s0 = inlined_call_operand.vmem [shape: f32[312,128], index: 0, kind: input, shape index: {}]   ;;  %s3389_s2 = inlined_call_operand.vmem [shape: f32[8,128], index: 2, kind: output, shape index: {}]  }
   0x1   :  { %2330 = vmatprep.subr.bf16.mxu0 %v2692_v0  ;;  %v2559_v1 = vld [vmem:[%s3387_s1] sm:$0xff]   ;;  %2332 = vmatprep.mubr.msk.bf16.mxu0 %vm2693_vm0, %v2692_v0  ;;  %v13_v3 = vld [vmem:[%s3388_s0 + $0x8] sm:$0xff]  ;;  %v14_v5 = vld [vmem:[%s3388_s0 + $0x10] sm:$0xff]  ;;  %s2696_s17 = smov 96   ;;  %vm247_vm3 = vcmask 523264   ;;  %vm250_vm4 = vcmask 785408  }
   0x2   :  { %v12_v2 = vld [vmem:[%s3388_s0] sm:$0xff]  ;;  %2331 = vmatpush3.bf16.msra.mxu0 %v2559_v1  ;;  %v15_v7 = vld [vmem:[%s3388_s0 + $0x18] sm:$0xff]  ;;  %v2560_v53 = vld [vmem:[%s3387_s1 + $0x28] sm:$0xff]   ;;  %vm394_vm5 = vcmask 64512   ;;  %s2697_s14 = smov 120   ;;  %s2698_s18 = smov 112  }
   0x3   :  { %v48_v4 = vpack.c.bf16 %v13_v3, %v12_v2  ;;  %v2152_v32 = vld [vmem:[%s3388_s0 + $0xa0] ss:$0 sm:$0xff]  ;;  %v2153_v34 = vld [vmem:[%s3388_s0 + $0xa1] ss:$0 sm:$0xff]  ;;  %v2561_v54 = vld [vmem:[%s3387_s1 + $0x30] sm:$0xff]   ;;  %2336 = vmatprep.subr.bf16.mxu1 %v2560_v53 }
   0x4   :  { %2337 = vmatpush3.bf16.msra.mxu1 %v2560_v53  ;;  %v2562_v55 = vld [vmem:[%s3387_s1 + $0x38] sm:$0xff]   ;;  %v2563_v56 = vld [vmem:[%s3387_s1 + $0x40] sm:$0xff]   ;;  %v2564_v63 = vld [vmem:[%s3387_s1 + $0x48] sm:$0xff]  }
   0x5   :  { %2333 = vmatmul.mubr.msk.bf16.vlgmr.msra.gmra.mrb[0].mxu0 %vm55_vm1, %v48_v4  ;;  %2338 = vmatprep.subr.bf16.mxu1 %v2561_v54  ;;  %v2565_v1 = vld [vmem:[%s3387_s1 + $0x50] sm:$0xff]   ;;  %v2154_v3 = vld [vmem:[%s3388_s0 + $0xa8] ss:$0 sm:$0xff]  ;;  %v148_v53 = vld [vmem:[%s3388_s0 + $0xb8] sm:$0xff] }
   0x8   :  { %2339 = vmatpush3.bf16.msra.mxu1 %v2561_v54 }
   0x9   :  { %2340 = vmatprep.subr.bf16.mxu1 %v2562_v55 }
   0xc   :  { %2341 = vmatpush3.bf16.msra.mxu1 %v2562_v55 }
   0xd   :  { %2342 = vmatprep.subr.bf16.mxu1 %v2563_v56 }
  0x10   :  { %2343 = vmatpush3.bf16.msra.mxu1 %v2563_v56 }
  0x11   :  { %2344 = vmatprep.subr.bf16.mxu1 %v2564_v63 }
  0x14   :  { %2345 = vmatpush3.bf16.msra.mxu1 %v2564_v63 }
  0x15   :  { %2346 = vmatprep.subr.bf16.mxu1 %v2565_v1 }
  0x18   :  { %2347 = vmatpush3.bf16.msra.mxu1 %v2565_v1  ;;  %v154_v1 = vld [vmem:[%s3388_s0 + $0xe8] sm:$0xff] }
  0xd8   :  { %v93_v6 = vpop.f32.mrb[0].mxu0 }
  0xd9   :  { %v94_v8 = vadd.f32 %v93_v6, %v14_v5  ;;  %v2334_v9 = vpop.f32.mrb[1].mxu0  ;;  %v2155_v5 = vld [vmem:[%s3388_s0 + $0xa9] ss:$0 sm:$0xff]  ;;  %v2566_v6 = vld [vmem:[%s3387_s1 + $0x58] sm:$0xff]  }
  0xda   :  { %v96_v10 = vpop.f32.mrb[2].mxu0  ;;  %2348 = vmatprep.subr.bf16.mxu1 %v2566_v6 }
  0xdb   :  { %v97_v11 = vadd.f32 %v96_v10, %v15_v7  ;;  %v2335_v12 = vpop.f32.mrb[3].mxu0  ;;  %v101_v13 = vsel %vm100_vm2, %v94_v8, 0.0  ;;  %2349 = vmatpush3.bf16.msra.mxu1 %v2566_v6 }
  0xdc   :  { %102 = vadd.xlane.f32.xlu0 %v101_v13 }
  0xdd   :  { %v104_v14 = vsel %vm100_vm2, %v97_v11, 0.0 }
  0xe0   :  { %105 = vadd.xlane.f32.xlu0 %v104_v14 }
 0x169   :  { %v103_v15 = vpop.xlane.xlu0 %102 }
 0x16a   :  { %v108_v16 = vmul.f32 0.03125, %v103_v15 }
 0x16c   :  { %v110_v17 = vsub.f32 %v94_v8, %v108_v16 }
 0x16d   :  { %v106_v18 = vpop.xlane.xlu0 %105 }
 0x16e   :  { %v109_v19 = vmul.f32 0.03125, %v106_v18  ;;  %v112_v20 = vmul.f32 %v110_v17, %v110_v17 }
 0x170   :  { %v111_v21 = vsub.f32 %v97_v11, %v109_v19  ;;  %v114_v22 = vsel %vm100_vm2, %v112_v20, 0.0  ;;  %v2567_v11 = vld [vmem:[%s3387_s1 + $0x60] sm:$0xff]  }
 0x171   :  { %115 = vadd.xlane.f32.xlu1 %v114_v22  ;;  %2350 = vmatprep.subr.bf16.mxu1 %v2567_v11 }
 0x172   :  { %v113_v23 = vmul.f32 %v111_v21, %v111_v21  ;;  %2351 = vmatpush3.bf16.msra.mxu1 %v2567_v11 }
 0x174   :  { %v117_v24 = vsel %vm100_vm2, %v113_v23, 0.0  ;;  %v2802_v23 = vld [vmem:[%s3388_s0 + $0x60] sm:$0xff] }
 0x175   :  { %118 = vadd.xlane.f32.xlu1 %v117_v24 }
 0x1fe   :  { %v116_v25 = vpop.xlane.xlu1 %115 }
 0x1ff   :  { %v120_v26 = vmul.f32 0.03125, %v116_v25  ;;  %v2808_v25 = vld [vmem:[%s3388_s0 + $0x78] sm:$0xff] }
 0x201   :  { %v122_v27 = vadd.f32 1e-05, %v120_v26  ;;  %v2813_v26 = vld [vmem:[%s3388_s0 + $0x88] sm:$0xff] }
 0x202   :  { %v119_v28 = vpop.xlane.xlu1 %118 }
 0x203   :  { %2596 = vrsqrt.f32 %v122_v27  ;;  %v121_v29 = vmul.f32 0.03125, %v119_v28  ;;  %v2818_v27 = vld [vmem:[%s3388_s0 + $0x68] sm:$0xff] }
 0x205   :  { %v123_v30 = vadd.f32 1e-05, %v121_v29 }
 0x207   :  { %2598 = vrsqrt.f32 %v123_v30  ;;  %v2824_v30 = vld [vmem:[%s3388_s0 + $0x80] sm:$0xff] }
 0x20d   :  { %v2597_v31 = vpop.eup %2596 }
 0x20e   :  { %v126_v33 = vmul.f32 %v2597_v31, %v110_v17 }
 0x210   :  { %v132_v35 = vmul.f32 %v2152_v32, %v126_v33 }
 0x211   :  { %v2599_v36 = vpop.eup %2598 }
 0x212   :  { %v2743_v37 = vadd.f32 %v2153_v34, %v132_v35  ;;  %v127_v38 = vmul.f32 %v2599_v36, %v111_v21  ;;  %v2796_v21 = vld [vmem:[%s3388_s0 + $0x70] sm:$0xff] }
 0x214   :  { %v187_v39 = vsel %vm100_vm2, %v2743_v37, 0.0  ;;  %v133_v40 = vmul.f32 %v2152_v32, %v127_v38 }
 0x215   :  { %188 = vadd.xlane.f32.xlu0 %v187_v39 }
 0x216   :  { %v2747_v41 = vadd.f32 %v2153_v34, %v133_v40 }
 0x218   :  { %v190_v42 = vsel %vm100_vm2, %v2747_v41, 0.0 }
 0x219   :  { %191 = vadd.xlane.f32.xlu1 %v190_v42  ;;  %v2836_v42 = vld [vmem:[%s3388_s0 + $0x98] sm:$0xff] }
 0x2a2   :  { %v189_v43 = vpop.xlane.xlu0 %188 }
 0x2a3   :  { %v193_v44 = vmul.f32 0.03125, %v189_v43 }
 0x2a5   :  { %v195_v45 = vsub.f32 %v2743_v37, %v193_v44  ;;  %v2841_v44 = vld [vmem:[%s3388_s0 + $0x90] sm:$0xff] }
 0x2a6   :  { %v192_v46 = vpop.xlane.xlu1 %191 }
 0x2a7   :  { %v194_v47 = vmul.f32 0.03125, %v192_v46  ;;  %v197_v48 = vmul.f32 %v195_v45, %v195_v45 }
 0x2a9   :  { %v196_v49 = vsub.f32 %v2747_v41, %v194_v47  ;;  %v199_v50 = vsel %vm100_vm2, %v197_v48, 0.0  ;;  %v149_v48 = vld [vmem:[%s3388_s0 + $0xc0] sm:$0xff] }
 0x2aa   :  { %200 = vadd.xlane.f32.xlu0 %v199_v50  ;;  %v150_v50 = vld [vmem:[%s3388_s0 + $0xc8] sm:$0xff] }
 0x2ab   :  { %v198_v51 = vmul.f32 %v196_v49, %v196_v49 }
 0x2ad   :  { %v202_v52 = vsel %vm100_vm2, %v198_v51, 0.0 }
 0x2ae   :  { %203 = vadd.xlane.f32.xlu1 %v202_v52  ;;  %v147_v52 = vld [vmem:[%s3388_s0 + $0xb0] sm:$0xff] }
 0x337   :  { %v201_v57 = vpop.xlane.xlu0 %200 }
 0x338   :  { %v205_v58 = vmul.f32 0.03125, %v201_v57 }
 0x33a   :  { %v207_v59 = vadd.f32 1e-05, %v205_v58 }
 0x33b   :  { %v204_v60 = vpop.xlane.xlu1 %203 }
 0x33c   :  { %2600 = vrsqrt.f32 %v207_v59  ;;  %v206_v61 = vmul.f32 0.03125, %v204_v60 }
 0x33e   :  { %v208_v62 = vadd.f32 1e-05, %v206_v61 }
 0x340   :  { %2602 = vrsqrt.f32 %v208_v62  ;;  %v153_v62 = vld [vmem:[%s3388_s0 + $0xe0] sm:$0xff] }
 0x346   :  { %v2601_v2 = vpop.eup %2600 }
 0x347   :  { %v211_v4 = vmul.f32 %v2601_v2, %v195_v45 }
 0x349   :  { %v217_v7 = vmul.f32 %v2154_v3, %v211_v4  ;;  %v152_v4 = vld [vmem:[%s3388_s0 + $0xd8] sm:$0xff] }
 0x34a   :  { %v2603_v8 = vpop.eup %2602 }
 0x34b   :  { %v223_v9 = vadd.f32 %v2155_v5, %v217_v7  ;;  %v212_v10 = vmul.f32 %v2603_v8, %v196_v49 }
 0x34d   :  { %233 = vrot.lane.b32.xlu1 %v223_v9, %s2694_s15  ;;  %227 = vrot.lane.b32.xlu0 %v223_v9, %s2695_s16  ;;  %v218_v12 = vmul.f32 %v2154_v3, %v212_v10  ;;  %v151_v3 = vld [vmem:[%s3388_s0 + $0xd0] sm:$0xff] }
 0x34f   :  { %v224_v13 = vadd.f32 %v2155_v5, %v218_v12 }
 0x351   :  { %229 = vrot.lane.b32.xlu1 %v224_v13, %s2695_s16  ;;  %239 = vrot.lane.b32.xlu0 %v223_v9, %s2696_s17 }
 0x355   :  { %235 = vrot.lane.b32.xlu1 %v224_v13, %s2694_s15 }
 0x359   :  { %241 = vrot.lane.b32.xlu1 %v224_v13, %s2696_s17 }
 0x3bf   :  { %v234_v14 = vpop.permute.xlu1 %233  ;;  %v228_v15 = vpop.permute.xlu0 %227 }
 0x3c0   :  { %v245_v17 = vsel %vm100_vm2, %v223_v9, %v228_v15 }
 0x3c1   :  { %v248_v20 = vsel %vm247_vm3, %v245_v17, %v234_v14 }
 0x3c3   :  { %v230_v16 = vpop.permute.xlu1 %229  ;;  %v240_v18 = vpop.permute.xlu0 %239 }
 0x3c4   :  { %v251_v22 = vsel %vm250_vm4, %v248_v20, %v240_v18  ;;  %v246_v24 = vsel %vm100_vm2, %v224_v13, %v230_v16 }
 0x3c5   :  { %v255_v31 = vmul.f32 %v251_v22, %v2796_v21  ;;  %v253_v35 = vmul.f32 %v251_v22, %v2802_v23  ;;  %v257_v38 = vmul.f32 %v251_v22, %v2824_v30  ;;  %v259_v46 = vmul.f32 %v251_v22, %v2841_v44  ;;  %v2907_v22 = vld [vmem:[%s3388_s0 + $0x20] sm:$0xff] }
 0x3c7   :  { %v236_v19 = vpop.permute.xlu1 %235 }
 0x3c8   :  { %v249_v28 = vsel %vm247_vm3, %v246_v24, %v236_v19 }
 0x3cb   :  { %v242_v29 = vpop.permute.xlu1 %241 }
 0x3cc   :  { %v252_v32 = vsel %vm250_vm4, %v249_v28, %v242_v29  ;;  %v2912_v28 = vld [vmem:[%s3388_s0 + $0x30] sm:$0xff] }
 0x3cd   :  { %v256_v33 = vmul.f32 %v252_v32, %v2808_v25  ;;  %v258_v34 = vmul.f32 %v252_v32, %v2813_v26  ;;  %v254_v36 = vmul.f32 %v252_v32, %v2818_v27  ;;  %v260_v45 = vmul.f32 %v252_v32, %v2836_v42 }
 0x3cf   :  { %v261_v39 = vpack.c.bf16 %v254_v36, %v253_v35  ;;  %v262_v40 = vpack.c.bf16 %v256_v33, %v255_v31  ;;  %v263_v43 = vpack.c.bf16 %v258_v34, %v257_v38  ;;  %v264_v47 = vpack.c.bf16 %v260_v45, %v259_v46  ;;  %v2917_v31 = vld [vmem:[%s3388_s0 + $0x28] sm:$0xff] }
 0x3d1   :  { %2352 = vmatprep.mubr.bf16.mxu1 %v261_v39  ;;  %v2926_v39 = vld [vmem:[%s3388_s0 + $0x38] sm:$0xff] }
 0x3d2   :  { %2353 = vmatmul.mubr.bf16.vlgmr.msra.gmra.mrb[0].mxu1 %v262_v40 }
 0x3d3   :  { %2356 = vmatprep.mubr.bf16.mxu1 %v263_v43 }
 0x3da   :  { %2357 = vmatmul.mubr.bf16.gmra.mrb[4].mxu1 %v264_v47  ;;  %v2934_v47 = vld [vmem:[%s3388_s0 + $0x58] sm:$0xff] }
 0x4a5   :  { %v2354_v49 = vpop.f32.mrb[0].mxu1 }
 0x4a6   :  { %v347_v51 = vpop.f32.mrb[1].mxu1  ;;  %v356_v55 = vadd.f32 %v2354_v49, %v149_v48  ;;  %v2939_v49 = vld [vmem:[%s3388_s0 + $0x40] sm:$0xff] }
 0x4a7   :  { %v2355_v54 = vpop.f32.mrb[2].mxu1  ;;  %v348_v58 = vadd.f32 %v347_v51, %v147_v52  ;;  %v2944_v51 = vld [vmem:[%s3388_s0 + $0x48] sm:$0xff] }
 0x4a8   :  { %v359_v56 = vadd.f32 %v2355_v54, %v150_v50  ;;  %v350_v57 = vpop.f32.mrb[3].mxu1 }
 0x4a9   :  { %v351_v59 = vadd.f32 %v350_v57, %v148_v53 }
 0x4aa   :  { %v2857_v60 = vpack.c.bf16 %v359_v56, %v356_v55  ;;  %v2954_v56 = vld [vmem:[%s3388_s0 + $0x50] sm:$0xff] }
 0x4ab   :  { %v2859_v61 = vpack.c.bf16 %v351_v59, %v348_v58 }
 0x4ac   :  { %388 = vrot.lane.b32.xlu1 %v2857_v60, %s2697_s14 }
 0x4ad   :  { %v2358_v63 = vpop.f32.mrb[4].mxu1  ;;  %386 = vrot.lane.b32.xlu0 %v2859_v61, %s2697_s14  ;;  %2368 = vmatprep.mubr.msk.bf16.mxu0 %vm394_vm5, %v2859_v61 }
 0x4ae   :  { %v363_v2 = vpop.f32.mrb[5].mxu1  ;;  %v372_v6 = vadd.f32 %v2358_v63, %v153_v62 }
 0x4af   :  { %v2359_v5 = vpop.f32.mrb[6].mxu1  ;;  %v364_v9 = vadd.f32 %v363_v2, %v151_v3 }
 0x4b0   :  { %v375_v7 = vadd.f32 %v2359_v5, %v154_v1  ;;  %v366_v8 = vpop.f32.mrb[7].mxu1 }
 0x4b1   :  { %v367_v10 = vadd.f32 %v366_v8, %v152_v4 }
 0x4b2   :  { %v2879_v11 = vpack.c.bf16 %v375_v7, %v372_v6 }
 0x4b3   :  { %v2881_v12 = vpack.c.bf16 %v367_v10, %v364_v9 }
 0x4b4   :  { %392 = vrot.lane.b32.xlu1 %v2879_v11, %s2697_s14 }
 0x4b5   :  { %390 = vrot.lane.b32.xlu0 %v2881_v12, %s2697_s14 }
 0x51e   :  { %v389_v15 = vpop.permute.xlu1 %388 }
 0x51f   :  { %v387_v13 = vpop.permute.xlu0 %386  ;;  %v411_v16 = vsel %vm394_vm5, %v389_v15, 0 }
 0x520   :  { %v408_v14 = vsel %vm394_vm5, %v387_v13, 0  ;;  %2544 = vmatprep.subr.msk.bf16.mxu0 %vm394_vm5, %v387_v13 }
 0x521   :  { %2361 = vmatpush3.bf16.xpose.msra.mxu0 %v408_v14 }
 0x522   :  { %2545 = vmatprep.subr.msk.bf16.mxu0 %vm394_vm5, %v389_v15 }
 0x526   :  { %v393_v19 = vpop.permute.xlu1 %392 }
 0x527   :  { %v391_v17 = vpop.permute.xlu0 %390  ;;  %v417_v20 = vsel %vm394_vm5, %v393_v19, 0 }
 0x528   :  { %v414_v18 = vsel %vm394_vm5, %v391_v17, 0 }
 0x529   :  { %2363 = vmatpush3.bf16.xpose.msra.mxu0 %v411_v16 }
 0x52a   :  { %2546 = vmatprep.subr.msk.bf16.mxu0 %vm394_vm5, %v391_v17 }
 0x531   :  { %2365 = vmatpush3.bf16.xpose.msra.mxu0 %v414_v18 }
 0x532   :  { %2547 = vmatprep.subr.msk.bf16.mxu0 %vm394_vm5, %v393_v19 }
 0x539   :  { %2367 = vmatpush3.bf16.xpose.msra.mxu0 %v417_v20 }
 0x53a   :  { %2392 = vmatprep.subr.bf16.mxu0 %v2692_v0 }
 0x540   :  { %2369 = vmatmul.mubr.msk.bf16.vlgmr.msra.gmra.mrb[4].mxu0 %vm394_vm5, %v2857_v60 }
 0x541   :  { %2372 = vmatprep.mubr.msk.bf16.mxu0 %vm394_vm5, %v2881_v12 }
 0x548   :  { %2373 = vmatmul.mubr.msk.bf16.gmra.mrb[8].mxu0 %vm394_vm5, %v2879_v11 }
 0x549   :  { %2394 = vmatprep.mubr.msk.bf16.mxu0 %vm2693_vm0, %v2692_v0 }
 0x613   :  { %v2370_v24 = vpop.f32.mrb[4].mxu0 }
 0x614   :  { %v453_v29 = vpop.f32.mrb[5].mxu0  ;;  %v462_v35 = vadd.f32 %v2370_v24, %v2912_v28 }
 0x615   :  { %v454_v32 = vadd.f32 %v453_v29, %v2907_v22  ;;  %v2371_v33 = vpop.f32.mrb[6].mxu0 }
 0x616   :  { %v456_v34 = vpop.f32.mrb[7].mxu0  ;;  %v465_v43 = vadd.f32 %v2371_v33, %v2926_v39  ;;  %v490_v46 = vsel %vm247_vm3, %v462_v35, -inf }
 0x617   :  { %v457_v36 = vadd.f32 %v456_v34, %v2917_v31  ;;  %v484_v38 = vsel %vm247_vm3, %v454_v32, -inf }
 0x618   :  { %485 = vmax.xlane.f32.xlu0 %v484_v38  ;;  %v493_v55 = vsel %vm247_vm3, %v465_v43, -inf }
 0x619   :  { %v487_v40 = vsel %vm247_vm3, %v457_v36, -inf }
 0x61a   :  { %488 = vmax.xlane.f32.xlu1 %v487_v40 }
 0x61b   :  { %v2374_v45 = vpop.f32.mrb[8].mxu0 }
 0x61c   :  { %v469_v48 = vpop.f32.mrb[9].mxu0  ;;  %491 = vmax.xlane.f32.xlu0 %v490_v46  ;;  %v478_v59 = vadd.f32 %v2374_v45, %v2954_v56 }
 0x61d   :  { %v2375_v50 = vpop.f32.mrb[10].mxu0  ;;  %v470_v54 = vadd.f32 %v469_v48, %v2939_v49 }
 0x61e   :  { %v2947_v52 = vadd.f32 %v2375_v50, %v2934_v47  ;;  %v472_v53 = vpop.f32.mrb[11].mxu0  ;;  %v502_v1 = vsel %vm247_vm3, %v478_v59, -inf }
 0x61f   :  { %v2957_v57 = vadd.f32 %v472_v53, %v2944_v51  ;;  %v496_v62 = vsel %vm247_vm3, %v470_v54, -inf }
 0x620   :  { %494 = vmax.xlane.f32.xlu0 %v493_v55  ;;  %v505_v58 = vsel %vm247_vm3, %v2947_v52, -inf }
 0x621   :  { %506 = vmax.xlane.f32.xlu1 %v505_v58  ;;  %v499_v63 = vsel %vm247_vm3, %v2957_v57, -inf }
 0x624   :  { %497 = vmax.xlane.f32.xlu0 %v496_v62 }
 0x625   :  { %500 = vmax.xlane.f32.xlu1 %v499_v63 }
 0x628   :  { %503 = vmax.xlane.f32.xlu0 %v502_v1 }
 0x6a5   :  { %v486_v2 = vpop.xlane.xlu0 %485 }
 0x6a6   :  { %v508_v3 = vsub.f32 %v454_v32, %v486_v2 }
 0x6a7   :  { %v489_v4 = vpop.xlane.xlu1 %488 }
 0x6a8   :  { %v516_v7 = vmul.f32 1.442695, %v508_v3  ;;  %v509_v8 = vsub.f32 %v457_v36, %v489_v4 }
 0x6a9   :  { %v492_v5 = vpop.xlane.xlu0 %491 }
 0x6aa   :  { %v510_v6 = vsub.f32 %v462_v35, %v492_v5  ;;  %v518_v14 = vmul.f32 1.442695, %v509_v8 }
 0x6ac   :  { %v520_v9 = vmul.f32 1.442695, %v510_v6 }
 0x6ad   :  { %v495_v10 = vpop.xlane.xlu0 %494 }
 0x6ae   :  { %2604 = vpow2.f32 %v520_v9  ;;  %v511_v13 = vsub.f32 %v465_v43, %v495_v10  ;;  %v507_v50 = vpop.xlane.xlu1 %506 }
 0x6af   :  { %2606 = vpow2.f32 %v516_v7  ;;  %v515_v53 = vsub.f32 %v2947_v52, %v507_v50 }
 0x6b0   :  { %v522_v15 = vmul.f32 1.442695, %v511_v13 }
 0x6b1   :  { %v498_v16 = vpop.xlane.xlu0 %497  ;;  %v530_v55 = vmul.f32 1.442695, %v515_v53 }
 0x6b2   :  { %2608 = vpow2.f32 %v522_v15  ;;  %v512_v17 = vsub.f32 %v470_v54, %v498_v16  ;;  %v501_v54 = vpop.xlane.xlu1 %500 }
 0x6b3   :  { %2610 = vpow2.f32 %v518_v14  ;;  %v513_v58 = vsub.f32 %v2957_v57, %v501_v54 }
 0x6b4   :  { %v524_v24 = vmul.f32 1.442695, %v512_v17 }
 0x6b5   :  { %v504_v18 = vpop.xlane.xlu0 %503 }
 0x6b6   :  { %v514_v19 = vsub.f32 %v478_v59, %v504_v18  ;;  %v526_v59 = vmul.f32 1.442695, %v513_v58 }
 0x6b8   :  { %v2966_v20 = vpop.eup %2604  ;;  %v528_v29 = vmul.f32 1.442695, %v514_v19 }
 0x6b9   :  { %v538_v32 = vsel %vm247_vm3, %v2966_v20, 0.0  ;;  %v2607_v33 = vpop.eup %2606 }
 0x6ba   :  { %2612 = vpow2.f32 %v528_v29  ;;  %539 = vadd.xlane.f32.xlu0 %v538_v32  ;;  %v532_v35 = vsel %vm247_vm3, %v2607_v33, 0.0 }
 0x6bb   :  { %2614 = vpow2.f32 %v524_v24 }
 0x6bc   :  { %v2970_v34 = vpop.eup %2608  ;;  %2616 = vpow2.f32 %v530_v55 }
 0x6bd   :  { %v541_v36 = vsel %vm247_vm3, %v2970_v34, 0.0  ;;  %v2611_v38 = vpop.eup %2610  ;;  %2618 = vpow2.f32 %v526_v59  ;;  %v2570_v59 = vld [vmem:[%s3387_s1 + $0x68] sm:$0xff]  }
 0x6be   :  { %533 = vadd.xlane.f32.xlu0 %v532_v35  ;;  %542 = vadd.xlane.f32.xlu1 %v541_v36  ;;  %v535_v40 = vsel %vm247_vm3, %v2611_v38, 0.0 }
 0x6c2   :  { %536 = vadd.xlane.f32.xlu1 %v535_v40 }
 0x6c4   :  { %v2976_v43 = vpop.eup %2612 }
 0x6c5   :  { %v550_v45 = vsel %vm247_vm3, %v2976_v43, 0.0  ;;  %v2980_v46 = vpop.eup %2614 }
 0x6c6   :  { %551 = vadd.xlane.f32.xlu0 %v550_v45  ;;  %v544_v48 = vsel %vm247_vm3, %v2980_v46, 0.0  ;;  %v2617_v62 = vpop.eup %2616 }
 0x6c7   :  { %v553_v63 = vsel %vm247_vm3, %v2617_v62, 0.0 }
 0x6ca   :  { %545 = vadd.xlane.f32.xlu0 %v544_v48 }
 0x6d3   :  { %578 = vrot.lane.b32.xlu1 %v2857_v60, %s2698_s18  ;;  %v2619_v60 = vpop.eup %2618 }
 0x6d7   :  { %580 = vrot.lane.b32.xlu1 %v2881_v12, %s2698_s18  ;;  %v547_v12 = vsel %vm247_vm3, %v2619_v60, 0.0 }
 0x6e0   :  { %576 = vrot.lane.b32.xlu0 %v2859_v61, %s2698_s18  ;;  %v2568_v61 = vld [vmem:[%s3387_s1 + $0x70] sm:$0xff]  }
 0x6e1   :  { %2393 = vmatpush3.bf16.msra.mxu0 %v2568_v61 }
 0x6e2   :  { %2398 = vmatprep.subr.bf16.mxu0 %v2692_v0 }
 0x6fb   :  { %554 = vadd.xlane.f32.xlu1 %v553_v63 }
 0x6ff   :  { %548 = vadd.xlane.f32.xlu1 %v547_v12 }
 0x710   :  { %582 = vrot.lane.b32.xlu1 %v2879_v11, %s2698_s18 }
 0x747   :  { %v540_v52 = vpop.xlane.xlu0 %539 }
 0x74b   :  { %v543_v57 = vpop.xlane.xlu1 %542  ;;  %v534_v1 = vpop.xlane.xlu0 %533 }
 0x74c   :  { %2620 = vrcp.f32 %v534_v1 }
 0x74f   :  { %v537_v2 = vpop.xlane.xlu1 %536 }
 0x750   :  { %2622 = vrcp.f32 %v537_v2 }
 0x751   :  { %2624 = vrcp.f32 %v543_v57 }
 0x752   :  { %2626 = vrcp.f32 %v540_v52 }
 0x753   :  { %v552_v3 = vpop.xlane.xlu0 %551  ;;  %v579_v7 = vpop.permute.xlu1 %578 }
 0x756   :  { %v2621_v5 = vpop.eup %2620 }
 0x757   :  { %v546_v4 = vpop.xlane.xlu0 %545  ;;  %v564_v11 = vmul.f32 %v2621_v5, %v2607_v33  ;;  %v581_v13 = vpop.permute.xlu1 %580 }
 0x75a   :  { %v2623_v6 = vpop.eup %2622 }
 0x75b   :  { %v577_v8 = vpop.permute.xlu0 %576  ;;  %v565_v9 = vmul.f32 %v2623_v6, %v2611_v38  ;;  %v2625_v15 = vpop.eup %2624 }
 0x75c   :  { %2376 = vmatprep.subr.bf16.mxu1 %v577_v8  ;;  %v2627_v17 = vpop.eup %2626  ;;  %v567_v18 = vmul.f32 %v2625_v15, %v2970_v34 }
 0x75d   :  { %2377 = vmatpush3.bf16.msra.mxu1 %v577_v8  ;;  %v572_v10 = vpack.c.bf16 %v565_v9, %v564_v11  ;;  %v566_v24 = vmul.f32 %v2627_v17, %v2966_v20  ;;  %v2569_v20 = vld [vmem:[%s3387_s1 + $0x78] sm:$0xff]  }
 0x75e   :  { %2378 = vmatprep.subr.bf16.mxu1 %v579_v7 }
 0x75f   :  { %2384 = vmatprep.mubr.msk.bf16.mxu1 %vm247_vm3, %v572_v10  ;;  %v573_v29 = vpack.c.bf16 %v567_v18, %v566_v24 }
 0x761   :  { %2379 = vmatpush3.bf16.msra.mxu1 %v579_v7 }
 0x762   :  { %2380 = vmatprep.subr.bf16.mxu1 %v581_v13 }
 0x765   :  { %2381 = vmatpush3.bf16.msra.mxu1 %v581_v13 }
 0x788   :  { %v555_v14 = vpop.xlane.xlu1 %554 }
 0x789   :  { %2628 = vrcp.f32 %v555_v14 }
 0x78a   :  { %2630 = vrcp.f32 %v546_v4  ;;  %v2571_v4 = vld [vmem:[%s3387_s1 + $0x80] sm:$0xff]  }
 0x78b   :  { %2632 = vrcp.f32 %v552_v3 }
 0x78c   :  { %v549_v16 = vpop.xlane.xlu1 %548 }
 0x78d   :  { %2634 = vrcp.f32 %v549_v16 }
 0x790   :  { %v583_v19 = vpop.permute.xlu1 %582 }
 0x791   :  { %2382 = vmatprep.subr.bf16.mxu1 %v583_v19 }
 0x792   :  { %2383 = vmatpush3.bf16.msra.mxu1 %v583_v19 }
 0x793   :  { %2404 = vmatprep.subr.bf16.mxu1 %v2692_v0  ;;  %v2629_v32 = vpop.eup %2628 }
 0x794   :  { %v2631_v33 = vpop.eup %2630  ;;  %v571_v38 = vmul.f32 %v2629_v32, %v2617_v62 }
 0x795   :  { %2385 = vmatmul.mubr.msk.bf16.vlgmr.msra.gmra.mrb[8].mxu1 %vm247_vm3, %v573_v29  ;;  %v2633_v35 = vpop.eup %2632  ;;  %v568_v40 = vmul.f32 %v2631_v33, %v2980_v46 }
 0x796   :  { %v570_v34 = vmul.f32 %v2633_v35, %v2976_v43  ;;  %2405 = vmatpush3.bf16.msra.mxu1 %v2569_v20 }
 0x797   :  { %v2635_v36 = vpop.eup %2634  ;;  %2416 = vmatprep.subr.bf16.mxu1 %v2692_v0 }
 0x798   :  { %v569_v45 = vmul.f32 %v2635_v36, %v2619_v60  ;;  %v575_v50 = vpack.c.bf16 %v571_v38, %v570_v34  ;;  %v2180_v34 = vld [vmem:[%s3388_s0 + $0xaa] ss:$0 sm:$0xff] }
 0x79a   :  { %v574_v48 = vpack.c.bf16 %v569_v45, %v568_v40 }
 0x79c   :  { %2388 = vmatprep.mubr.msk.bf16.mxu1 %vm247_vm3, %v574_v48 }
 0x79d   :  { %2389 = vmatmul.mubr.msk.bf16.gmra.mrb[12].mxu1 %vm247_vm3, %v575_v50 }
 0x79e   :  { %2406 = vmatprep.mubr.msk.bf16.mxu1 %vm2693_vm0, %v2692_v0 }
 0x868   :  { %v2386_v46 = vpop.f32.mrb[8].mxu1 }
 0x869   :  { %v634_v53 = vpop.f32.mrb[9].mxu1  ;;  %v667_v43 = vsel %vm394_vm5, %v2386_v46, 0.0 }
 0x86a   :  { %v2387_v54 = vpop.f32.mrb[10].mxu1  ;;  %v665_v62 = vsel %vm394_vm5, %v634_v53, 0.0 }
 0x86b   :  { %v668_v55 = vsel %vm394_vm5, %v2387_v54, 0.0  ;;  %v637_v58 = vpop.f32.mrb[11].mxu1 }
 0x86c   :  { %v674_v63 = vpack.c.bf16 %v668_v55, %v667_v43  ;;  %v666_v60 = vsel %vm394_vm5, %v637_v58, 0.0 }
 0x86d   :  { %v673_v12 = vpack.c.bf16 %v666_v60, %v665_v62 }
 0x86e   :  { %2395 = vmatmul.mubr.msk.bf16.vlgmr.msra.gmra.mrb[12].mxu0 %vm55_vm1, %v674_v63 }
 0x86f   :  { %2399 = vmatpush3.bf16.msra.mxu0 %v2570_v59  ;;  %2400 = vmatprep.mubr.msk.bf16.mxu0 %vm2693_vm0, %v2692_v0 }
 0x870   :  { %v2390_v61 = vpop.f32.mrb[12].mxu1  ;;  %2410 = vmatprep.subr.bf16.mxu0 %v2692_v0 }
 0x871   :  { %v650_v52 = vpop.f32.mrb[13].mxu1  ;;  %v671_v1 = vsel %vm394_vm5, %v2390_v61, 0.0 }
 0x872   :  { %v2391_v57 = vpop.f32.mrb[14].mxu1  ;;  %v669_v5 = vsel %vm394_vm5, %v650_v52, 0.0 }
 0x873   :  { %v672_v2 = vsel %vm394_vm5, %v2391_v57, 0.0  ;;  %v653_v3 = vpop.f32.mrb[15].mxu1 }
 0x874   :  { %v676_v6 = vpack.c.bf16 %v672_v2, %v671_v1  ;;  %v670_v7 = vsel %vm394_vm5, %v653_v3, 0.0  ;;  %v2572_v1 = vld [vmem:[%s3387_s1 + $0x88] sm:$0xff]   ;;  %v2573_v2 = vld [vmem:[%s3387_s1 + $0x90] sm:$0xff]  }
 0x875   :  { %v675_v8 = vpack.c.bf16 %v670_v7, %v669_v5 }
 0x876   :  { %2401 = vmatmul.mubr.msk.bf16.vlgmr.msra.gmra.mrb[16].mxu0 %vm55_vm1, %v673_v12 }
 0x877   :  { %2407 = vmatmul.mubr.msk.bf16.vlgmr.msra.gmra.mrb[16].mxu1 %vm55_vm1, %v675_v8  ;;  %2411 = vmatpush3.bf16.msra.mxu0 %v2571_v4 }
 0x878   :  { %2412 = vmatprep.mubr.msk.bf16.mxu0 %vm2693_vm0, %v2692_v0  ;;  %2420 = vmatprep.mubr.msk.bf16.mxu1 %vm2693_vm0, %v2692_v0 }
 0x879   :  { %2424 = vmatprep.subr.bf16.mxu0 %v2692_v0  ;;  %2417 = vmatpush3.bf16.msra.mxu1 %v2572_v1 }
 0x87a   :  { %2418 = vmatprep.subr.bf16.mxu1 %v2692_v0 }
 0x87d   :  { %2419 = vmatpush3.bf16.msra.mxu1 %v2573_v2 }
 0x87e   :  { %2413 = vmatmul.mubr.msk.bf16.vlgmr.msra.gmra.mrb[20].mxu0 %vm55_vm1, %v676_v6 }
 0x87f   :  { %2428 = vmatprep.mubr.msk.bf16.mxu0 %vm2693_vm0, %v2692_v0 }
 0x941   :  { %v720_v11 = vpop.f32.mrb[12].mxu0 }
 0x942   :  { %v2396_v9 = vpop.f32.mrb[13].mxu0 }
 0x943   :  { %v723_v10 = vpop.f32.mrb[14].mxu0 }
 0x944   :  { %v2397_v13 = vpop.f32.mrb[15].mxu0 }
 0x949   :  { %v770_v14 = vpop.f32.mrb[16].mxu0 }
 0x94a   :  { %v771_v15 = vadd.f32 %v770_v14, %v720_v11  ;;  %v2402_v16 = vpop.f32.mrb[17].mxu0  ;;  %v820_v17 = vpop.f32.mrb[16].mxu1 }
 0x94b   :  { %v773_v18 = vpop.f32.mrb[18].mxu0  ;;  %v2408_v19 = vpop.f32.mrb[17].mxu1  ;;  %v2182_v16 = vld [vmem:[%s3388_s0 + $0xac] ss:$0 sm:$0xff] }
 0x94c   :  { %v827_v24 = vadd.f32 %v820_v17, %v771_v15  ;;  %v774_v29 = vadd.f32 %v773_v18, %v723_v10  ;;  %v2403_v32 = vpop.f32.mrb[19].mxu0  ;;  %v823_v33 = vpop.f32.mrb[18].mxu1  ;;  %v2181_v10 = vld [vmem:[%s3388_s0 + $0xab] ss:$0 sm:$0xff] }
 0x94d   :  { %v2409_v35 = vpop.f32.mrb[19].mxu1  ;;  %v2575_v32 = vld [vmem:[%s3387_s1 + $0xa0] sm:$0xff]  }
 0x94e   :  { %v828_v36 = vadd.f32 %v823_v33, %v774_v29  ;;  %v2574_v29 = vld [vmem:[%s3387_s1 + $0x98] sm:$0xff]   ;;  %v2183_v33 = vld [vmem:[%s3388_s0 + $0xad] ss:$0 sm:$0xff] }
 0x94f   :  { %2425 = vmatpush3.bf16.msra.mxu0 %v2574_v29 }
 0x950   :  { %2426 = vmatprep.subr.bf16.mxu0 %v2692_v0 }
 0x951   :  { %v872_v38 = vpop.f32.mrb[20].mxu0 }
 0x952   :  { %v879_v40 = vadd.f32 %v872_v38, %v827_v24  ;;  %v2414_v45 = vpop.f32.mrb[21].mxu0 }
 0x953   :  { %v875_v48 = vpop.f32.mrb[22].mxu0  ;;  %2427 = vmatpush3.bf16.msra.mxu0 %v2575_v32 }
 0x954   :  { %v881_v50 = vadd.f32 %v879_v40, %v2743_v37  ;;  %v880_v20 = vadd.f32 %v875_v48, %v828_v36  ;;  %v2415_v46 = vpop.f32.mrb[23].mxu0 }
 0x956   :  { %v3047_v53 = vadd.f32 %v2180_v34, %v881_v50  ;;  %v882_v54 = vadd.f32 %v880_v20, %v2747_v41 }
 0x958   :  { %v3050_v43 = vadd.f32 %v2180_v34, %v882_v54  ;;  %v889_v55 = vsel %vm100_vm2, %v3047_v53, 0.0 }
 0x959   :  { %890 = vadd.xlane.f32.xlu0 %v889_v55 }
 0x95a   :  { %v892_v58 = vsel %vm100_vm2, %v3050_v43, 0.0 }
 0x95b   :  { %893 = vadd.xlane.f32.xlu1 %v892_v58 }
 0x9e6   :  { %v891_v59 = vpop.xlane.xlu0 %890 }
 0x9e7   :  { %v895_v62 = vmul.f32 0.03125, %v891_v59 }
 0x9e8   :  { %v894_v63 = vpop.xlane.xlu1 %893 }
 0x9e9   :  { %v897_v37 = vsub.f32 %v3047_v53, %v895_v62  ;;  %v896_v60 = vmul.f32 0.03125, %v894_v63 }
 0x9eb   :  { %v898_v12 = vsub.f32 %v3050_v43, %v896_v60  ;;  %v899_v61 = vmul.f32 %v897_v37, %v897_v37 }
 0x9ed   :  { %v901_v41 = vsel %vm100_vm2, %v899_v61, 0.0  ;;  %v900_v52 = vmul.f32 %v898_v12, %v898_v12 }
 0x9ee   :  { %902 = vadd.xlane.f32.xlu0 %v901_v41 }
 0x9ef   :  { %v904_v57 = vsel %vm100_vm2, %v900_v52, 0.0 }
 0x9f2   :  { %905 = vadd.xlane.f32.xlu0 %v904_v57 }
 0xa7b   :  { %v903_v3 = vpop.xlane.xlu0 %902 }
 0xa7c   :  { %v907_v4 = vmul.f32 0.03125, %v903_v3  ;;  %v2187_v3 = vld [vmem:[%s3388_s0 + $0xae] ss:$0 sm:$0xff] }
 0xa7e   :  { %v909_v5 = vadd.f32 1e-05, %v907_v4 }
 0xa7f   :  { %v906_v6 = vpop.xlane.xlu0 %905 }
 0xa80   :  { %2636 = vrsqrt.f32 %v909_v5  ;;  %v908_v7 = vmul.f32 0.03125, %v906_v6 }
 0xa82   :  { %v910_v8 = vadd.f32 1e-05, %v908_v7 }
 0xa84   :  { %2638 = vrsqrt.f32 %v910_v8 }
 0xa8a   :  { %v2637_v11 = vpop.eup %2636 }
 0xa8b   :  { %v913_v9 = vmul.f32 %v2637_v11, %v897_v37 }
 0xa8d   :  { %v919_v14 = vmul.f32 %v2181_v10, %v913_v9 }
 0xa8e   :  { %v2639_v13 = vpop.eup %2638 }
 0xa8f   :  { %v914_v15 = vmul.f32 %v2639_v13, %v898_v12  ;;  %v925_v18 = vadd.f32 %v2182_v16, %v919_v14 }
 0xa91   :  { %v920_v17 = vmul.f32 %v2181_v10, %v914_v15 }
 0xa93   :  { %v926_v19 = vadd.f32 %v2182_v16, %v920_v17 }
 0xa95   :  { %v927_v24 = vpack.c.bf16 %v926_v19, %v925_v18 }
 0xa97   :  { %2421 = vmatmul.mubr.msk.bf16.vlgmr.msra.gmra.mrb[20].mxu1 %vm100_vm2, %v927_v24 }
 0xb6a   :  { %v981_v35 = vpop.f32.mrb[20].mxu1 }
 0xb6b   :  { %v982_v36 = vadd.f32 %v2183_v33, %v981_v35  ;;  %v2422_v38 = vpop.f32.mrb[21].mxu1  ;;  %v2577_v35 = vld [vmem:[%s3387_s1 + $0xb0] sm:$0xff]  }
 0xb6c   :  { %v984_v40 = vpop.f32.mrb[22].mxu1  ;;  %v2579_v38 = vld [vmem:[%s3387_s1 + $0xc0] sm:$0xff]  }
 0xb6d   :  { %v990_v45 = vmul.f32 %v982_v36, %v982_v36  ;;  %v985_v34 = vadd.f32 %v2183_v33, %v984_v40  ;;  %v2423_v48 = vpop.f32.mrb[23].mxu1  ;;  %v988_v61 = vmul.f32 0.5, %v982_v36  ;;  %v2576_v33 = vld [vmem:[%s3387_s1 + $0xa8] sm:$0xff]  }
 0xb6e   :  { %2432 = vmatprep.subr.bf16.mxu1 %v2576_v33 }
 0xb6f   :  { %v992_v50 = vmul.f32 %v990_v45, %v982_v36  ;;  %v991_v20 = vmul.f32 %v985_v34, %v985_v34  ;;  %v989_v41 = vmul.f32 0.5, %v985_v34  ;;  %2433 = vmatpush3.bf16.msra.mxu1 %v2576_v33 }
 0xb70   :  { %2434 = vmatprep.subr.bf16.mxu1 %v2577_v35 }
 0xb71   :  { %v994_v46 = vmul.f32 0.044715, %v992_v50  ;;  %v993_v54 = vmul.f32 %v991_v20, %v985_v34 }
 0xb73   :  { %v996_v55 = vadd.f32 %v994_v46, %v982_v36  ;;  %v995_v58 = vmul.f32 0.044715, %v993_v54  ;;  %v2578_v36 = vld [vmem:[%s3387_s1 + $0xb8] sm:$0xff]   ;;  %2435 = vmatpush3.bf16.msra.mxu1 %v2577_v35  ;;  %v2580_v46 = vld [vmem:[%s3387_s1 + $0xc8] sm:$0xff]   ;;  %v2581_v54 = vld [vmem:[%s3387_s1 + $0xd0] sm:$0xff]  }
 0xb74   :  { %2436 = vmatprep.subr.bf16.mxu1 %v2578_v36 }
 0xb75   :  { %v998_v59 = vmul.f32 0.7978846, %v996_v55  ;;  %v997_v62 = vadd.f32 %v995_v58, %v985_v34  ;;  %v2191_v58 = vld [vmem:[%s3388_s0 + $0xf0] ss:$0 sm:$0xff] }
 0xb77   :  { %2640 = vtanh.f32 %v998_v59  ;;  %v999_v63 = vmul.f32 0.7978846, %v997_v62  ;;  %2437 = vmatpush3.bf16.msra.mxu1 %v2578_v36 }
 0xb78   :  { %2438 = vmatprep.subr.bf16.mxu1 %v2579_v38 }
 0xb79   :  { %2642 = vtanh.f32 %v999_v63  ;;  %v2192_v63 = vld [vmem:[%s3388_s0 + $0xf1] ss:$0 sm:$0xff] }
 0xb7b   :  { %2439 = vmatpush3.bf16.msra.mxu1 %v2579_v38 }
 0xb7c   :  { %2440 = vmatprep.subr.bf16.mxu1 %v2580_v46 }
 0xb7f   :  { %2441 = vmatpush3.bf16.msra.mxu1 %v2580_v46 }
 0xb80   :  { %2442 = vmatprep.subr.bf16.mxu1 %v2581_v54 }
 0xb81   :  { %v2641_v37 = vpop.eup %2640 }
 0xb82   :  { %v1002_v60 = vadd.f32 1.0, %v2641_v37  ;;  %v2582_v37 = vld [vmem:[%s3387_s1 + $0xd8] sm:$0xff]  }
 0xb83   :  { %v2643_v12 = vpop.eup %2642  ;;  %2443 = vmatpush3.bf16.msra.mxu1 %v2581_v54  ;;  %v1083_v54 = vld [vmem:[%s3388_s0 + $0x130] sm:$0xff] }
 0xb84   :  { %v1003_v52 = vadd.f32 1.0, %v2643_v12  ;;  %v1004_v57 = vmul.f32 %v1002_v60, %v988_v61  ;;  %2444 = vmatprep.subr.bf16.mxu1 %v2582_v37 }
 0xb86   :  { %v1005_v1 = vmul.f32 %v1003_v52, %v989_v41  ;;  %v2583_v52 = vld [vmem:[%s3387_s1 + $0xe0] sm:$0xff]  }
 0xb87   :  { %2445 = vmatpush3.bf16.msra.mxu1 %v2582_v37 }
 0xb88   :  { %v1006_v2 = vpack.c.bf16 %v1005_v1, %v1004_v57  ;;  %2446 = vmatprep.subr.bf16.mxu1 %v2583_v52 }
 0xb8a   :  { %2429 = vmatmul.mubr.msk.bf16.vlgmr.msra.gmra.mrb[24].mxu0 %vm100_vm2, %v1006_v2 }
 0xb8b   :  { %2447 = vmatpush3.bf16.msra.mxu1 %v2583_v52 }
 0xc5d   :  { %v1060_v4 = vpop.f32.mrb[24].mxu0 }
 0xc5e   :  { %v1061_v5 = vadd.f32 %v2187_v3, %v1060_v4  ;;  %v2430_v6 = vpop.f32.mrb[25].mxu0 }
 0xc5f   :  { %v1063_v7 = vpop.f32.mrb[26].mxu0 }
 0xc60   :  { %v3089_v8 = vadd.f32 %v1061_v5, %v3047_v53  ;;  %v1064_v11 = vadd.f32 %v2187_v3, %v1063_v7  ;;  %v2431_v9 = vpop.f32.mrb[27].mxu0 }
 0xc62   :  { %v3092_v10 = vadd.f32 %v1064_v11, %v3050_v43  ;;  %v1116_v13 = vsel %vm100_vm2, %v3089_v8, 0.0 }
 0xc63   :  { %1117 = vadd.xlane.f32.xlu0 %v1116_v13 }
 0xc64   :  { %v1119_v14 = vsel %vm100_vm2, %v3092_v10, 0.0 }
 0xc65   :  { %1120 = vadd.xlane.f32.xlu1 %v1119_v14 }
 0xcf0   :  { %v1118_v15 = vpop.xlane.xlu0 %1117 }
 0xcf1   :  { %v1122_v16 = vmul.f32 0.03125, %v1118_v15 }
 0xcf2   :  { %v1121_v17 = vpop.xlane.xlu1 %1120 }
 0xcf3   :  { %v1124_v18 = vsub.f32 %v3089_v8, %v1122_v16  ;;  %v1123_v53 = vmul.f32 0.03125, %v1121_v17 }
 0xcf5   :  { %v1125_v19 = vsub.f32 %v3092_v10, %v1123_v53  ;;  %v1126_v24 = vmul.f32 %v1124_v18, %v1124_v18 }
 0xcf7   :  { %v1128_v43 = vsel %vm100_vm2, %v1126_v24, 0.0  ;;  %v1127_v29 = vmul.f32 %v1125_v19, %v1125_v19 }
 0xcf8   :  { %1129 = vadd.xlane.f32.xlu0 %v1128_v43 }
 0xcf9   :  { %v1131_v32 = vsel %vm100_vm2, %v1127_v29, 0.0 }
 0xcfa   :  { %1132 = vadd.xlane.f32.xlu1 %v1131_v32 }
 0xd85   :  { %v1130_v40 = vpop.xlane.xlu0 %1129 }
 0xd86   :  { %v1134_v45 = vmul.f32 0.03125, %v1130_v40 }
 0xd87   :  { %v1133_v34 = vpop.xlane.xlu1 %1132 }
 0xd88   :  { %v1136_v48 = vadd.f32 1e-05, %v1134_v45  ;;  %v1135_v50 = vmul.f32 0.03125, %v1133_v34 }
 0xd8a   :  { %2644 = vrsqrt.f32 %v1136_v48  ;;  %v1137_v20 = vadd.f32 1e-05, %v1135_v50 }
 0xd8c   :  { %2646 = vrsqrt.f32 %v1137_v20  ;;  %v1082_v20 = vld [vmem:[%s3388_s0 + $0x128] sm:$0xff] }
 0xd94   :  { %v2645_v55 = vpop.eup %2644 }
 0xd95   :  { %v1140_v59 = vmul.f32 %v2645_v55, %v1124_v18 }
 0xd96   :  { %v2647_v62 = vpop.eup %2646 }
 0xd97   :  { %v1146_v60 = vmul.f32 %v2191_v58, %v1140_v59  ;;  %v1141_v12 = vmul.f32 %v2647_v62, %v1125_v19  ;;  %v1081_v59 = vld [vmem:[%s3388_s0 + $0x120] sm:$0xff] }
 0xd99   :  { %v1152_v61 = vadd.f32 %v2192_v63, %v1146_v60  ;;  %v1147_v41 = vmul.f32 %v2191_v58, %v1141_v12  ;;  %v1080_v58 = vld [vmem:[%s3388_s0 + $0x118] sm:$0xff] }
 0xd9b   :  { %1156 = vrot.lane.b32.xlu0 %v1152_v61, %s2695_s16  ;;  %1162 = vrot.lane.b32.xlu1 %v1152_v61, %s2694_s15  ;;  %v1153_v57 = vadd.f32 %v2192_v63, %v1147_v41 }
 0xd9f   :  { %1168 = vrot.lane.b32.xlu0 %v1152_v61, %s2696_s17  ;;  %1158 = vrot.lane.b32.xlu1 %v1153_v57, %s2695_s16 }
 0xda3   :  { %1164 = vrot.lane.b32.xlu1 %v1153_v57, %s2694_s15 }
 0xda7   :  { %1170 = vrot.lane.b32.xlu1 %v1153_v57, %s2696_s17 }
 0xe0d   :  { %v1163_v1 = vpop.permute.xlu1 %1162  ;;  %v1157_v2 = vpop.permute.xlu0 %1156 }
 0xe0e   :  { %v1174_v4 = vsel %vm100_vm2, %v1152_v61, %v1157_v2 }
 0xe0f   :  { %v1176_v7 = vsel %vm247_vm3, %v1174_v4, %v1163_v1 }
 0xe11   :  { %v1159_v3 = vpop.permute.xlu1 %1158  ;;  %v1169_v5 = vpop.permute.xlu0 %1168 }
 0xe12   :  { %v1178_v11 = vsel %vm250_vm4, %v1176_v7, %v1169_v5  ;;  %v1175_v9 = vsel %vm100_vm2, %v1153_v57, %v1159_v3 }
 0xe13   :  { %v1180_v15 = vmul.f32 %v1178_v11, %v2802_v23  ;;  %v1182_v17 = vmul.f32 %v1178_v11, %v2796_v21  ;;  %v1184_v24 = vmul.f32 %v1178_v11, %v2824_v30  ;;  %v1186_v33 = vmul.f32 %v1178_v11, %v2841_v44  ;;  %v1078_v21 = vld [vmem:[%s3388_s0 + $0x108] sm:$0xff]  ;;  %v1076_v30 = vld [vmem:[%s3388_s0 + $0xf8] sm:$0xff] }
 0xe15   :  { %v1165_v6 = vpop.permute.xlu1 %1164 }
 0xe16   :  { %v1177_v13 = vsel %vm247_vm3, %v1175_v9, %v1165_v6 }
 0xe19   :  { %v1171_v14 = vpop.permute.xlu1 %1170 }
 0xe1a   :  { %v1179_v16 = vsel %vm250_vm4, %v1177_v13, %v1171_v14 }
 0xe1b   :  { %v1181_v18 = vmul.f32 %v1179_v16, %v2818_v27  ;;  %v1183_v53 = vmul.f32 %v1179_v16, %v2808_v25  ;;  %v1185_v19 = vmul.f32 %v1179_v16, %v2813_v26  ;;  %v1187_v23 = vmul.f32 %v1179_v16, %v2836_v42  ;;  %v1079_v26 = vld [vmem:[%s3388_s0 + $0x110] sm:$0xff]  ;;  %v1077_v42 = vld [vmem:[%s3388_s0 + $0x100] sm:$0xff] }
 0xe1d   :  { %v1188_v43 = vpack.c.bf16 %v1181_v18, %v1180_v15  ;;  %v1189_v29 = vpack.c.bf16 %v1183_v53, %v1182_v17  ;;  %v1190_v32 = vpack.c.bf16 %v1185_v19, %v1184_v24  ;;  %v1191_v35 = vpack.c.bf16 %v1187_v23, %v1186_v33 }
 0xe1f   :  { %2448 = vmatprep.mubr.bf16.mxu1 %v1188_v43 }
 0xe20   :  { %2449 = vmatmul.mubr.bf16.vlgmr.msra.gmra.mrb[24].mxu1 %v1189_v29 }
 0xe21   :  { %2452 = vmatprep.mubr.bf16.mxu1 %v1190_v32 }
 0xe28   :  { %2453 = vmatmul.mubr.bf16.gmra.mrb[28].mxu1 %v1191_v35 }
 0xef3   :  { %v2450_v25 = vpop.f32.mrb[24].mxu1 }
 0xef4   :  { %v1274_v27 = vpop.f32.mrb[25].mxu1  ;;  %v1283_v36 = vadd.f32 %v2450_v25, %v1078_v21 }
 0xef5   :  { %v2451_v44 = vpop.f32.mrb[26].mxu1  ;;  %v1275_v45 = vadd.f32 %v1274_v27, %v1076_v30 }
 0xef6   :  { %v1286_v38 = vadd.f32 %v2451_v44, %v1079_v26  ;;  %v1277_v40 = vpop.f32.mrb[27].mxu1 }
 0xef7   :  { %v1278_v34 = vadd.f32 %v1277_v40, %v1077_v42 }
 0xef8   :  { %v3164_v48 = vpack.c.bf16 %v1286_v38, %v1283_v36 }
 0xef9   :  { %v3166_v50 = vpack.c.bf16 %v1278_v34, %v1275_v45 }
 0xefa   :  { %1315 = vrot.lane.b32.xlu1 %v3164_v48, %s2697_s14 }
 0xefb   :  { %v2454_v46 = vpop.f32.mrb[28].mxu1  ;;  %1313 = vrot.lane.b32.xlu0 %v3166_v50, %s2697_s14  ;;  %2464 = vmatprep.mubr.msk.bf16.mxu0 %vm394_vm5, %v3166_v50 }
 0xefc   :  { %v1290_v55 = vpop.f32.mrb[29].mxu1  ;;  %v1299_v63 = vadd.f32 %v2454_v46, %v1082_v20 }
 0xefd   :  { %v2455_v62 = vpop.f32.mrb[30].mxu1  ;;  %v1291_v12 = vadd.f32 %v1290_v55, %v1080_v58 }
 0xefe   :  { %v1302_v37 = vadd.f32 %v2455_v62, %v1083_v54  ;;  %v1293_v60 = vpop.f32.mrb[31].mxu1 }
 0xeff   :  { %v1294_v61 = vadd.f32 %v1293_v60, %v1081_v59 }
 0xf00   :  { %v3186_v41 = vpack.c.bf16 %v1302_v37, %v1299_v63 }
 0xf01   :  { %v3188_v52 = vpack.c.bf16 %v1294_v61, %v1291_v12 }
 0xf02   :  { %1319 = vrot.lane.b32.xlu1 %v3186_v41, %s2697_s14 }
 0xf03   :  { %1317 = vrot.lane.b32.xlu0 %v3188_v52, %s2697_s14 }
 0xf6c   :  { %v1316_v2 = vpop.permute.xlu1 %1315 }
 0xf6d   :  { %v1314_v57 = vpop.permute.xlu0 %1313  ;;  %v1337_v3 = vsel %vm394_vm5, %v1316_v2, 0 }
 0xf6e   :  { %v1334_v1 = vsel %vm394_vm5, %v1314_v57, 0  ;;  %2548 = vmatprep.subr.msk.bf16.mxu0 %vm394_vm5, %v1314_v57 }
 0xf6f   :  { %2457 = vmatpush3.bf16.xpose.msra.mxu0 %v1334_v1 }
 0xf70   :  { %2549 = vmatprep.subr.msk.bf16.mxu0 %vm394_vm5, %v1316_v2 }
 0xf74   :  { %v1320_v6 = vpop.permute.xlu1 %1319 }
 0xf75   :  { %v1318_v4 = vpop.permute.xlu0 %1317  ;;  %v1343_v7 = vsel %vm394_vm5, %v1320_v6, 0 }
 0xf76   :  { %v1340_v5 = vsel %vm394_vm5, %v1318_v4, 0 }
 0xf77   :  { %2459 = vmatpush3.bf16.xpose.msra.mxu0 %v1337_v3 }
 0xf78   :  { %2550 = vmatprep.subr.msk.bf16.mxu0 %vm394_vm5, %v1318_v4 }
 0xf7f   :  { %2461 = vmatpush3.bf16.xpose.msra.mxu0 %v1340_v5 }
 0xf80   :  { %2551 = vmatprep.subr.msk.bf16.mxu0 %vm394_vm5, %v1320_v6 }
 0xf87   :  { %2463 = vmatpush3.bf16.xpose.msra.mxu0 %v1343_v7 }
 0xf88   :  { %2488 = vmatprep.subr.bf16.mxu0 %v2692_v0 }
 0xf8e   :  { %2465 = vmatmul.mubr.msk.bf16.vlgmr.msra.gmra.mrb[28].mxu0 %vm394_vm5, %v3164_v48 }
 0xf8f   :  { %2468 = vmatprep.mubr.msk.bf16.mxu0 %vm394_vm5, %v3188_v52 }
 0xf96   :  { %2469 = vmatmul.mubr.msk.bf16.gmra.mrb[32].mxu0 %vm394_vm5, %v3186_v41 }
 0xf97   :  { %2490 = vmatprep.mubr.msk.bf16.mxu0 %vm2693_vm0, %v2692_v0 }
0x1061   :  { %v2466_v11 = vpop.f32.mrb[28].mxu0 }
0x1062   :  { %v1379_v9 = vpop.f32.mrb[29].mxu0  ;;  %v1388_v16 = vadd.f32 %v2466_v11, %v2912_v28 }
0x1063   :  { %v1380_v13 = vadd.f32 %v1379_v9, %v2907_v22  ;;  %v2467_v14 = vpop.f32.mrb[30].mxu0 }
0x1064   :  { %v1382_v15 = vpop.f32.mrb[31].mxu0  ;;  %v1391_v19 = vadd.f32 %v2467_v14, %v2926_v39  ;;  %v1416_v43 = vsel %vm247_vm3, %v1388_v16, -inf }
0x1065   :  { %v1383_v17 = vadd.f32 %v1382_v15, %v2917_v31  ;;  %v1410_v18 = vsel %vm247_vm3, %v1380_v13, -inf }
0x1066   :  { %1411 = vmax.xlane.f32.xlu0 %v1410_v18  ;;  %v1419_v23 = vsel %vm247_vm3, %v1391_v19, -inf }
0x1067   :  { %v1413_v53 = vsel %vm247_vm3, %v1383_v17, -inf }
0x1068   :  { %1414 = vmax.xlane.f32.xlu1 %v1413_v53 }
0x1069   :  { %v2470_v24 = vpop.f32.mrb[32].mxu0 }
0x106a   :  { %v1395_v29 = vpop.f32.mrb[33].mxu0  ;;  %1417 = vmax.xlane.f32.xlu0 %v1416_v43  ;;  %v1404_v35 = vadd.f32 %v2470_v24, %v2954_v56 }
0x106b   :  { %v2471_v22 = vpop.f32.mrb[34].mxu0  ;;  %v1396_v31 = vadd.f32 %v1395_v29, %v2939_v49 }
0x106c   :  { %v3219_v32 = vadd.f32 %v2471_v22, %v2934_v47  ;;  %v1398_v28 = vpop.f32.mrb[35].mxu0  ;;  %v1428_v25 = vsel %vm247_vm3, %v1404_v35, -inf }
0x106d   :  { %v1399_v33 = vadd.f32 %v1398_v28, %v2944_v51  ;;  %v1422_v21 = vsel %vm247_vm3, %v1396_v31, -inf }
0x106e   :  { %1420 = vmax.xlane.f32.xlu0 %v1419_v23  ;;  %v1431_v39 = vsel %vm247_vm3, %v3219_v32, -inf }
0x106f   :  { %1432 = vmax.xlane.f32.xlu1 %v1431_v39  ;;  %v1425_v47 = vsel %vm247_vm3, %v1399_v33, -inf }
0x1072   :  { %1423 = vmax.xlane.f32.xlu0 %v1422_v21 }
0x1073   :  { %1426 = vmax.xlane.f32.xlu1 %v1425_v47 }
0x1076   :  { %1429 = vmax.xlane.f32.xlu0 %v1428_v25 }
0x10f3   :  { %v1412_v49 = vpop.xlane.xlu0 %1411 }
0x10f4   :  { %v1434_v26 = vsub.f32 %v1380_v13, %v1412_v49 }
0x10f5   :  { %v1415_v27 = vpop.xlane.xlu1 %1414 }
0x10f6   :  { %v1442_v42 = vmul.f32 1.442695, %v1434_v26  ;;  %v1435_v44 = vsub.f32 %v1383_v17, %v1415_v27 }
0x10f7   :  { %v1418_v51 = vpop.xlane.xlu0 %1417 }
0x10f8   :  { %v1436_v30 = vsub.f32 %v1388_v16, %v1418_v51  ;;  %v1444_v40 = vmul.f32 1.442695, %v1435_v44 }
0x10fa   :  { %v1446_v36 = vmul.f32 1.442695, %v1436_v30 }
0x10fb   :  { %v1421_v38 = vpop.xlane.xlu0 %1420 }
0x10fc   :  { %2648 = vpow2.f32 %v1446_v36  ;;  %v1437_v56 = vsub.f32 %v1391_v19, %v1421_v38  ;;  %v1433_v5 = vpop.xlane.xlu1 %1432 }
0x10fd   :  { %2650 = vpow2.f32 %v1442_v42  ;;  %v1441_v6 = vsub.f32 %v3219_v32, %v1433_v5  ;;  %v2587_v5 = vld [vmem:[%s3387_s1 + $0x100] sm:$0xff]  }
0x10fe   :  { %v1448_v45 = vmul.f32 1.442695, %v1437_v56 }
0x10ff   :  { %v1424_v34 = vpop.xlane.xlu0 %1423  ;;  %v1456_v11 = vmul.f32 1.442695, %v1441_v6 }
0x1100   :  { %2652 = vpow2.f32 %v1448_v45  ;;  %v1438_v20 = vsub.f32 %v1396_v31, %v1424_v34  ;;  %v1427_v7 = vpop.xlane.xlu1 %1426  ;;  %v2585_v34 = vld [vmem:[%s3387_s1 + $0xf8] sm:$0xff]  }
0x1101   :  { %2654 = vpow2.f32 %v1444_v40  ;;  %v1439_v9 = vsub.f32 %v1399_v33, %v1427_v7 }
0x1102   :  { %v1450_v58 = vmul.f32 1.442695, %v1438_v20 }
0x1103   :  { %v1430_v46 = vpop.xlane.xlu0 %1429  ;;  %v1452_v13 = vmul.f32 1.442695, %v1439_v9 }
0x1104   :  { %v1440_v54 = vsub.f32 %v1404_v35, %v1430_v46 }
0x1106   :  { %v3230_v55 = vpop.eup %2648  ;;  %v1454_v59 = vmul.f32 1.442695, %v1440_v54 }
0x1107   :  { %v1464_v62 = vsel %vm247_vm3, %v3230_v55, 0.0  ;;  %v2651_v63 = vpop.eup %2650 }
0x1108   :  { %2656 = vpow2.f32 %v1454_v59  ;;  %1465 = vadd.xlane.f32.xlu0 %v1464_v62  ;;  %v1458_v60 = vsel %vm247_vm3, %v2651_v63, 0.0  ;;  %v2586_v62 = vld [vmem:[%s3387_s1 + $0xe8] sm:$0xff]  }
0x1109   :  { %2658 = vpow2.f32 %v1450_v58 }
0x110a   :  { %v3234_v37 = vpop.eup %2652  ;;  %2660 = vpow2.f32 %v1456_v11 }
0x110b   :  { %v1467_v12 = vsel %vm247_vm3, %v3234_v37, 0.0  ;;  %v2655_v61 = vpop.eup %2654  ;;  %2662 = vpow2.f32 %v1452_v13 }
0x110c   :  { %1459 = vadd.xlane.f32.xlu0 %v1458_v60  ;;  %1468 = vadd.xlane.f32.xlu1 %v1467_v12  ;;  %v1461_v57 = vsel %vm247_vm3, %v2655_v61, 0.0 }
0x1110   :  { %1462 = vadd.xlane.f32.xlu1 %v1461_v57 }
0x1112   :  { %v3240_v1 = vpop.eup %2656 }
0x1113   :  { %v1476_v2 = vsel %vm247_vm3, %v3240_v1, 0.0  ;;  %v3244_v3 = vpop.eup %2658 }
0x1114   :  { %1477 = vadd.xlane.f32.xlu0 %v1476_v2  ;;  %v1470_v4 = vsel %vm247_vm3, %v3244_v3, 0.0  ;;  %v2661_v14 = vpop.eup %2660 }
0x1115   :  { %v1479_v15 = vsel %vm247_vm3, %v2661_v14, 0.0  ;;  %v2663_v16 = vpop.eup %2662 }
0x1118   :  { %1471 = vadd.xlane.f32.xlu0 %v1470_v4 }
0x1121   :  { %1504 = vrot.lane.b32.xlu1 %v3164_v48, %s2698_s18  ;;  %v1473_v48 = vsel %vm247_vm3, %v2663_v16, 0.0 }
0x1125   :  { %1506 = vrot.lane.b32.xlu1 %v3188_v52, %s2698_s18 }
0x112e   :  { %1502 = vrot.lane.b32.xlu0 %v3166_v50, %s2698_s18  ;;  %v2584_v50 = vld [vmem:[%s3387_s1 + $0xf0] sm:$0xff]  }
0x112f   :  { %2489 = vmatpush3.bf16.msra.mxu0 %v2584_v50 }
0x1130   :  { %2494 = vmatprep.subr.bf16.mxu0 %v2692_v0 }
0x1149   :  { %1480 = vadd.xlane.f32.xlu1 %v1479_v15 }
0x114d   :  { %1474 = vadd.xlane.f32.xlu1 %v1473_v48 }
0x115e   :  { %1508 = vrot.lane.b32.xlu1 %v3186_v41, %s2698_s18 }
0x1195   :  { %v1466_v52 = vpop.xlane.xlu0 %1465 }
0x1199   :  { %v1469_v17 = vpop.xlane.xlu1 %1468  ;;  %v1460_v18 = vpop.xlane.xlu0 %1459 }
0x119a   :  { %2664 = vrcp.f32 %v1460_v18 }
0x119d   :  { %v1463_v53 = vpop.xlane.xlu1 %1462 }
0x119e   :  { %2666 = vrcp.f32 %v1463_v53 }
0x119f   :  { %2668 = vrcp.f32 %v1469_v17 }
0x11a0   :  { %2670 = vrcp.f32 %v1466_v52 }
0x11a1   :  { %v1478_v19 = vpop.xlane.xlu0 %1477  ;;  %v1505_v22 = vpop.permute.xlu1 %1504 }
0x11a4   :  { %v2665_v43 = vpop.eup %2664 }
0x11a5   :  { %v1472_v24 = vpop.xlane.xlu0 %1471  ;;  %v1490_v41 = vmul.f32 %v2665_v43, %v2651_v63  ;;  %v1507_v23 = vpop.permute.xlu1 %1506 }
0x11a8   :  { %v2667_v29 = vpop.eup %2666 }
0x11a9   :  { %v1503_v32 = vpop.permute.xlu0 %1502  ;;  %v1491_v28 = vmul.f32 %v2667_v29, %v2655_v61  ;;  %v2669_v39 = vpop.eup %2668 }
0x11aa   :  { %2472 = vmatprep.subr.bf16.mxu1 %v1503_v32  ;;  %v2671_v21 = vpop.eup %2670  ;;  %v1493_v47 = vmul.f32 %v2669_v39, %v3234_v37 }
0x11ab   :  { %2473 = vmatpush3.bf16.msra.mxu1 %v1503_v32  ;;  %v1498_v31 = vpack.c.bf16 %v1491_v28, %v1490_v41  ;;  %v1492_v49 = vmul.f32 %v2671_v21, %v3230_v55 }
0x11ac   :  { %2474 = vmatprep.subr.bf16.mxu1 %v1505_v22 }
0x11ad   :  { %2480 = vmatprep.mubr.msk.bf16.mxu1 %vm247_vm3, %v1498_v31  ;;  %v1499_v26 = vpack.c.bf16 %v1493_v47, %v1492_v49 }
0x11af   :  { %2475 = vmatpush3.bf16.msra.mxu1 %v1505_v22 }
0x11b0   :  { %2476 = vmatprep.subr.bf16.mxu1 %v1507_v23 }
0x11b3   :  { %2477 = vmatpush3.bf16.msra.mxu1 %v1507_v23  ;;  %v2217_v23 = vld [vmem:[%s3388_s0 + $0xf2] ss:$0 sm:$0xff] }
0x11d6   :  { %v1481_v33 = vpop.xlane.xlu1 %1480 }
0x11d7   :  { %2672 = vrcp.f32 %v1481_v33 }
0x11d8   :  { %2674 = vrcp.f32 %v1472_v24 }
0x11d9   :  { %2676 = vrcp.f32 %v1478_v19 }
0x11da   :  { %v1475_v35 = vpop.xlane.xlu1 %1474 }
0x11db   :  { %2678 = vrcp.f32 %v1475_v35 }
0x11de   :  { %v1509_v25 = vpop.permute.xlu1 %1508 }
0x11df   :  { %2478 = vmatprep.subr.bf16.mxu1 %v1509_v25 }
0x11e0   :  { %2479 = vmatpush3.bf16.msra.mxu1 %v1509_v25 }
0x11e1   :  { %2500 = vmatprep.subr.bf16.mxu1 %v2692_v0  ;;  %v2673_v27 = vpop.eup %2672 }
0x11e2   :  { %v2675_v51 = vpop.eup %2674  ;;  %v1497_v44 = vmul.f32 %v2673_v27, %v2661_v14 }
0x11e3   :  { %2481 = vmatmul.mubr.msk.bf16.vlgmr.msra.gmra.mrb[32].mxu1 %vm247_vm3, %v1499_v26  ;;  %v2677_v30 = vpop.eup %2676  ;;  %v1494_v36 = vmul.f32 %v2675_v51, %v3244_v3 }
0x11e4   :  { %v1496_v56 = vmul.f32 %v2677_v30, %v3240_v1  ;;  %2501 = vmatpush3.bf16.msra.mxu1 %v2585_v34  ;;  %v2589_v34 = vld [vmem:[%s3387_s1 + $0x110] sm:$0xff]  }
0x11e5   :  { %v2679_v42 = vpop.eup %2678  ;;  %2512 = vmatprep.subr.bf16.mxu1 %v2692_v0 }
0x11e6   :  { %v1495_v38 = vmul.f32 %v2679_v42, %v2663_v16  ;;  %v1501_v45 = vpack.c.bf16 %v1497_v44, %v1496_v56 }
0x11e8   :  { %v1500_v40 = vpack.c.bf16 %v1495_v38, %v1494_v36 }
0x11ea   :  { %2484 = vmatprep.mubr.msk.bf16.mxu1 %vm247_vm3, %v1500_v40 }
0x11eb   :  { %2485 = vmatmul.mubr.msk.bf16.gmra.mrb[36].mxu1 %vm247_vm3, %v1501_v45  ;;  %v2588_v45 = vld [vmem:[%s3387_s1 + $0x108] sm:$0xff]  }
0x11ec   :  { %2502 = vmatprep.mubr.msk.bf16.mxu1 %vm2693_vm0, %v2692_v0 }
0x12b6   :  { %v2482_v20 = vpop.f32.mrb[32].mxu1 }
0x12b7   :  { %v1560_v46 = vpop.f32.mrb[33].mxu1  ;;  %v1593_v55 = vsel %vm394_vm5, %v2482_v20, 0.0 }
0x12b8   :  { %v2483_v54 = vpop.f32.mrb[34].mxu1  ;;  %v1591_v63 = vsel %vm394_vm5, %v1560_v46, 0.0 }
0x12b9   :  { %v1594_v58 = vsel %vm394_vm5, %v2483_v54, 0.0  ;;  %v1563_v59 = vpop.f32.mrb[35].mxu1 }
0x12ba   :  { %v1600_v37 = vpack.c.bf16 %v1594_v58, %v1593_v55  ;;  %v1592_v60 = vsel %vm394_vm5, %v1563_v59, 0.0 }
0x12bb   :  { %v1599_v12 = vpack.c.bf16 %v1592_v60, %v1591_v63 }
0x12bc   :  { %2491 = vmatmul.mubr.msk.bf16.vlgmr.msra.gmra.mrb[36].mxu0 %vm55_vm1, %v1600_v37  ;;  %v2218_v37 = vld [vmem:[%s3388_s0 + $0xf3] ss:$0 sm:$0xff] }
0x12bd   :  { %2495 = vmatpush3.bf16.msra.mxu0 %v2586_v62  ;;  %2496 = vmatprep.mubr.msk.bf16.mxu0 %vm2693_vm0, %v2692_v0 }
0x12be   :  { %v2486_v61 = vpop.f32.mrb[36].mxu1  ;;  %2506 = vmatprep.subr.bf16.mxu0 %v2692_v0 }
0x12bf   :  { %v1576_v57 = vpop.f32.mrb[37].mxu1  ;;  %v1597_v2 = vsel %vm394_vm5, %v2486_v61, 0.0 }
0x12c0   :  { %v2487_v1 = vpop.f32.mrb[38].mxu1  ;;  %v1595_v6 = vsel %vm394_vm5, %v1576_v57, 0.0  ;;  %v2219_v57 = vld [vmem:[%s3388_s0 + $0xf4] ss:$0 sm:$0xff] }
0x12c1   :  { %v1598_v3 = vsel %vm394_vm5, %v2487_v1, 0.0  ;;  %v1579_v4 = vpop.f32.mrb[39].mxu1 }
0x12c2   :  { %v1602_v7 = vpack.c.bf16 %v1598_v3, %v1597_v2  ;;  %v1596_v11 = vsel %vm394_vm5, %v1579_v4, 0.0 }
0x12c3   :  { %v1601_v9 = vpack.c.bf16 %v1596_v11, %v1595_v6  ;;  %v2591_v6 = vld [vmem:[%s3387_s1 + $0x120] sm:$0xff]  }
0x12c4   :  { %2497 = vmatmul.mubr.msk.bf16.vlgmr.msra.gmra.mrb[40].mxu0 %vm55_vm1, %v1599_v12 }
0x12c5   :  { %2503 = vmatmul.mubr.msk.bf16.vlgmr.msra.gmra.mrb[40].mxu1 %vm55_vm1, %v1601_v9  ;;  %2507 = vmatpush3.bf16.msra.mxu0 %v2587_v5  ;;  %v2590_v5 = vld [vmem:[%s3387_s1 + $0x118] sm:$0xff]  }
0x12c6   :  { %2508 = vmatprep.mubr.msk.bf16.mxu0 %vm2693_vm0, %v2692_v0  ;;  %2516 = vmatprep.mubr.msk.bf16.mxu1 %vm2693_vm0, %v2692_v0 }
0x12c7   :  { %2520 = vmatprep.subr.bf16.mxu0 %v2692_v0  ;;  %2513 = vmatpush3.bf16.msra.mxu1 %v2588_v45 }
0x12c8   :  { %2514 = vmatprep.subr.bf16.mxu1 %v2692_v0 }
0x12cb   :  { %2515 = vmatpush3.bf16.msra.mxu1 %v2589_v34 }
0x12cc   :  { %2509 = vmatmul.mubr.msk.bf16.vlgmr.msra.gmra.mrb[44].mxu0 %vm55_vm1, %v1602_v7  ;;  %2528 = vmatprep.subr.bf16.mxu1 %v2692_v0  ;;  %v2220_v7 = vld [vmem:[%s3388_s0 + $0xf5] ss:$0 sm:$0xff] }
0x12cd   :  { %2524 = vmatprep.mubr.msk.bf16.mxu0 %vm2693_vm0, %v2692_v0  ;;  %2521 = vmatpush3.bf16.msra.mxu0 %v2590_v5 }
0x12ce   :  { %2522 = vmatprep.subr.bf16.mxu0 %v2692_v0 }
0x12d1   :  { %2523 = vmatpush3.bf16.msra.mxu0 %v2591_v6 }
0x12d2   :  { %2536 = vmatprep.subr.bf16.mxu0 %v2692_v0 }
0x138f   :  { %v1646_v13 = vpop.f32.mrb[36].mxu0 }
0x1390   :  { %v2492_v14 = vpop.f32.mrb[37].mxu0 }
0x1391   :  { %v1649_v15 = vpop.f32.mrb[38].mxu0 }
0x1392   :  { %v2493_v16 = vpop.f32.mrb[39].mxu0 }
0x1397   :  { %v1696_v48 = vpop.f32.mrb[40].mxu0 }
0x1398   :  { %v1697_v50 = vadd.f32 %v1696_v48, %v1646_v13  ;;  %v2498_v52 = vpop.f32.mrb[41].mxu0  ;;  %v1746_v17 = vpop.f32.mrb[40].mxu1 }
0x1399   :  { %v1699_v18 = vpop.f32.mrb[42].mxu0  ;;  %v2504_v53 = vpop.f32.mrb[41].mxu1 }
0x139a   :  { %v1753_v19 = vadd.f32 %v1746_v17, %v1697_v50  ;;  %v1700_v24 = vadd.f32 %v1699_v18, %v1649_v15  ;;  %v2499_v43 = vpop.f32.mrb[43].mxu0  ;;  %v1749_v29 = vpop.f32.mrb[42].mxu1 }
0x139b   :  { %v2505_v22 = vpop.f32.mrb[43].mxu1 }
0x139c   :  { %v1754_v32 = vadd.f32 %v1749_v29, %v1700_v24 }
0x139f   :  { %v1798_v41 = vpop.f32.mrb[44].mxu0 }
0x13a0   :  { %v1805_v28 = vadd.f32 %v1798_v41, %v1753_v19  ;;  %v2510_v31 = vpop.f32.mrb[45].mxu0 }
0x13a1   :  { %v1801_v33 = vpop.f32.mrb[46].mxu0 }
0x13a2   :  { %v1807_v39 = vadd.f32 %v1805_v28, %v3089_v8  ;;  %v1806_v35 = vadd.f32 %v1801_v33, %v1754_v32  ;;  %v2511_v21 = vpop.f32.mrb[47].mxu0 }
0x13a3   :  { %v2592_v21 = vld [vmem:[%s3387_s1 + $0x8] sm:$0xff]  }
0x13a4   :  { %v3310_v47 = vadd.f32 %v2217_v23, %v1807_v39  ;;  %v1808_v25 = vadd.f32 %v1806_v35, %v3092_v10 }
0x13a6   :  { %v1815_v49 = vsel %vm100_vm2, %v3310_v47, 0.0  ;;  %v1814_v26 = vadd.f32 %v2217_v23, %v1808_v25  ;;  %v2593_v25 = vld [vmem:[%s3387_s1 + $0x10] sm:$0xff]  }
0x13a7   :  { %1816 = vadd.xlane.f32.xlu0 %v1815_v49  ;;  %v2224_v49 = vld [vmem:[%s3388_s0 + $0xf6] ss:$0 sm:$0xff] }
0x13a8   :  { %v1818_v27 = vsel %vm100_vm2, %v1814_v26, 0.0 }
0x13a9   :  { %1819 = vadd.xlane.f32.xlu1 %v1818_v27 }
0x1434   :  { %v1817_v51 = vpop.xlane.xlu0 %1816 }
0x1435   :  { %v1821_v30 = vmul.f32 0.03125, %v1817_v51 }
0x1436   :  { %v1820_v42 = vpop.xlane.xlu1 %1819 }
0x1437   :  { %v1823_v44 = vsub.f32 %v3310_v47, %v1821_v30  ;;  %v1822_v8 = vmul.f32 0.03125, %v1820_v42 }
0x1439   :  { %v1824_v36 = vsub.f32 %v1814_v26, %v1822_v8  ;;  %v1825_v38 = vmul.f32 %v1823_v44, %v1823_v44 }
0x143b   :  { %v1827_v56 = vsel %vm100_vm2, %v1825_v38, 0.0  ;;  %v1826_v40 = vmul.f32 %v1824_v36, %v1824_v36 }
0x143c   :  { %1828 = vadd.xlane.f32.xlu0 %v1827_v56 }
0x143d   :  { %v1830_v10 = vsel %vm100_vm2, %v1826_v40, 0.0 }
0x1440   :  { %1831 = vadd.xlane.f32.xlu0 %v1830_v10 }
0x14c9   :  { %v1829_v20 = vpop.xlane.xlu0 %1828 }
0x14ca   :  { %v1833_v46 = vmul.f32 0.03125, %v1829_v20 }
0x14cc   :  { %v1835_v54 = vadd.f32 1e-05, %v1833_v46 }
0x14cd   :  { %v1832_v55 = vpop.xlane.xlu0 %1831 }
0x14ce   :  { %2680 = vrsqrt.f32 %v1835_v54  ;;  %v1834_v58 = vmul.f32 0.03125, %v1832_v55 }
0x14d0   :  { %v1836_v59 = vadd.f32 1e-05, %v1834_v58 }
0x14d2   :  { %2682 = vrsqrt.f32 %v1836_v59 }
0x14d8   :  { %v2681_v62 = vpop.eup %2680 }
0x14d9   :  { %v1839_v63 = vmul.f32 %v2681_v62, %v1823_v44 }
0x14db   :  { %v1845_v12 = vmul.f32 %v2218_v37, %v1839_v63 }
0x14dc   :  { %v2683_v60 = vpop.eup %2682 }
0x14dd   :  { %v1840_v61 = vmul.f32 %v2683_v60, %v1824_v36  ;;  %v1851_v2 = vadd.f32 %v2219_v57, %v1845_v12  ;;  %v2228_v36 = vld [vmem:[%s3388_s0 + $0xa2] ss:$0 sm:$0xff] }
0x14df   :  { %v1846_v1 = vmul.f32 %v2218_v37, %v1840_v61 }
0x14e1   :  { %v1852_v3 = vadd.f32 %v2219_v57, %v1846_v1  ;;  %v2594_v1 = vld [vmem:[%s3387_s1 + $0x18] sm:$0xff]  }
0x14e3   :  { %v1853_v4 = vpack.c.bf16 %v1852_v3, %v1851_v2  ;;  %v2595_v2 = vld [vmem:[%s3387_s1 + $0x20] sm:$0xff]  }
0x14e5   :  { %2517 = vmatmul.mubr.msk.bf16.vlgmr.msra.gmra.mrb[44].mxu1 %vm100_vm2, %v1853_v4 }
0x14e6   :  { %2532 = vmatprep.mubr.msk.bf16.mxu1 %vm2693_vm0, %v2692_v0  ;;  %2529 = vmatpush3.bf16.msra.mxu1 %v2592_v21 }
0x14e7   :  { %2530 = vmatprep.subr.bf16.mxu1 %v2692_v0 }
0x14ea   :  { %2531 = vmatpush3.bf16.msra.mxu1 %v2593_v25 }
0x15b8   :  { %v1907_v11 = vpop.f32.mrb[44].mxu1 }
0x15b9   :  { %v1908_v9 = vadd.f32 %v2220_v7, %v1907_v11  ;;  %v2518_v13 = vpop.f32.mrb[45].mxu1 }
0x15ba   :  { %v1910_v14 = vpop.f32.mrb[46].mxu1 }
0x15bb   :  { %v1916_v15 = vmul.f32 %v1908_v9, %v1908_v9  ;;  %v1911_v16 = vadd.f32 %v2220_v7, %v1910_v14  ;;  %v2519_v48 = vpop.f32.mrb[47].mxu1  ;;  %v1914_v28 = vmul.f32 0.5, %v1908_v9  ;;  %v2232_v7 = vld [vmem:[%s3388_s0 + $0xa3] ss:$0 sm:$0xff] }
0x15bd   :  { %v1918_v50 = vmul.f32 %v1916_v15, %v1908_v9  ;;  %v1917_v52 = vmul.f32 %v1911_v16, %v1911_v16  ;;  %v1915_v31 = vmul.f32 0.5, %v1911_v16 }
0x15bf   :  { %v1920_v17 = vmul.f32 0.044715, %v1918_v50  ;;  %v1919_v18 = vmul.f32 %v1917_v52, %v1911_v16 }
0x15c1   :  { %v1922_v53 = vadd.f32 %v1920_v17, %v1908_v9  ;;  %v1921_v19 = vmul.f32 0.044715, %v1919_v18  ;;  %v2233_v9 = vld [vmem:[%s3388_s0 + $0xa4] ss:$0 sm:$0xff] }
0x15c3   :  { %v1924_v24 = vmul.f32 0.7978846, %v1922_v53  ;;  %v1923_v43 = vadd.f32 %v1921_v19, %v1911_v16 }
0x15c5   :  { %2684 = vtanh.f32 %v1924_v24  ;;  %v1925_v29 = vmul.f32 0.7978846, %v1923_v43 }
0x15c7   :  { %2686 = vtanh.f32 %v1925_v29 }
0x15cf   :  { %v2685_v22 = vpop.eup %2684 }
0x15d0   :  { %v1928_v32 = vadd.f32 1.0, %v2685_v22 }
0x15d1   :  { %v2687_v41 = vpop.eup %2686 }
0x15d2   :  { %v1929_v23 = vadd.f32 1.0, %v2687_v41  ;;  %v1930_v33 = vmul.f32 %v1928_v32, %v1914_v28 }
0x15d4   :  { %v1931_v39 = vmul.f32 %v1929_v23, %v1915_v31 }
0x15d6   :  { %v1932_v35 = vpack.c.bf16 %v1931_v39, %v1930_v33 }
0x15d8   :  { %2525 = vmatmul.mubr.msk.bf16.vlgmr.msra.gmra.mrb[48].mxu0 %vm100_vm2, %v1932_v35 }
0x15d9   :  { %2540 = vmatprep.mubr.msk.bf16.mxu0 %vm2693_vm0, %v2692_v0  ;;  %2537 = vmatpush3.bf16.msra.mxu0 %v2594_v1 }
0x15da   :  { %2538 = vmatprep.subr.bf16.mxu0 %v2692_v0  ;;  %v2234_v0 = vld [vmem:[%s3388_s0 + $0xa5] ss:$0 sm:$0xff] }
0x15dd   :  { %2539 = vmatpush3.bf16.msra.mxu0 %v2595_v2 }
0x16ab   :  { %v1986_v26 = vpop.f32.mrb[48].mxu0 }
0x16ac   :  { %v1987_v27 = vadd.f32 %v2224_v49, %v1986_v26  ;;  %v2526_v51 = vpop.f32.mrb[49].mxu0 }
0x16ad   :  { %v1989_v30 = vpop.f32.mrb[50].mxu0 }
0x16ae   :  { %v1992_v42 = vadd.f32 %v1987_v27, %v3310_v47  ;;  %v2527_v44 = vpop.f32.mrb[51].mxu0 }
0x16b0   :  { %v1993_v8 = vpack.c.bf16 %v1992_v42, %v1992_v42 }
0x16b2   :  { %2533 = vmatmul.mubr.msk.bf16.vlgmr.msra.gmra.mrb[48].mxu1 %vm100_vm2, %v1993_v8 }
0x1785   :  { %v2047_v38 = vpop.f32.mrb[48].mxu1 }
0x1786   :  { %v2048_v56 = vadd.f32 %v2228_v36, %v2047_v38  ;;  %v2534_v40 = vpop.f32.mrb[49].mxu1 }
0x1787   :  { %v2050_v10 = vpop.f32.mrb[50].mxu1 }
0x1788   :  { %v2054_v45 = vmul.f32 %v2048_v56, %v2048_v56  ;;  %v2535_v34 = vpop.f32.mrb[51].mxu1  ;;  %v2053_v58 = vmul.f32 0.5, %v2048_v56 }
0x178a   :  { %v2055_v20 = vmul.f32 %v2054_v45, %v2048_v56 }
0x178c   :  { %v2056_v46 = vmul.f32 0.044715, %v2055_v20 }
0x178e   :  { %v2057_v54 = vadd.f32 %v2056_v46, %v2048_v56 }
0x1790   :  { %v2058_v55 = vmul.f32 0.7978846, %v2057_v54 }
0x1792   :  { %2688 = vtanh.f32 %v2058_v55 }
0x179c   :  { %v2689_v47 = vpop.eup %2688 }
0x179d   :  { %v2060_v59 = vadd.f32 1.0, %v2689_v47 }
0x179f   :  { %v2061_v62 = vmul.f32 %v2060_v59, %v2053_v58 }
0x17a1   :  { %v2062_v63 = vsel %vm100_vm2, %v2061_v62, 0.0 }
0x17a2   :  { %2063 = vadd.xlane.f32.xlu0 %v2062_v63 }
0x182f   :  { %v2064_v37 = vpop.xlane.xlu0 %2063 }
0x1830   :  { %v2065_v60 = vmul.f32 0.03125, %v2064_v37 }
0x1832   :  { %v2066_v12 = vsub.f32 %v2061_v62, %v2065_v60 }
0x1834   :  { %v2067_v61 = vmul.f32 %v2066_v12, %v2066_v12 }
0x1836   :  { %v2068_v57 = vsel %vm100_vm2, %v2067_v61, 0.0 }
0x1837   :  { %2069 = vadd.xlane.f32.xlu1 %v2068_v57 }
0x18c4   :  { %v2070_v3 = vpop.xlane.xlu1 %2069 }
0x18c5   :  { %v2071_v4 = vmul.f32 0.03125, %v2070_v3 }
0x18c7   :  { %v2072_v5 = vadd.f32 1e-05, %v2071_v4 }
0x18c9   :  { %2690 = vrsqrt.f32 %v2072_v5 }
0x18d3   :  { %v2691_v6 = vpop.eup %2690 }
0x18d4   :  { %v2074_v11 = vmul.f32 %v2691_v6, %v2066_v12 }
0x18d6   :  { %v2079_v13 = vmul.f32 %v2232_v7, %v2074_v11 }
0x18d8   :  { %v2084_v14 = vadd.f32 %v2233_v9, %v2079_v13 }
0x18da   :  { %v2085_v15 = vpack.c.bf16 %v2084_v14, %v2084_v14 }
0x18dc   :  { %2541 = vmatmul.mubr.msk.bf16.vlgmr.msra.gmra.mrb[52].mxu0 %vm100_vm2, %v2085_v15 }
0x19af   :  { %v2139_v16 = vpop.f32.mrb[52].mxu0 }
0x19b0   :  { %v2140_v48 = vadd.f32 %v2234_v0, %v2139_v16  ;;  %v2542_v50 = vpop.f32.mrb[53].mxu0 }
0x19b1   :  { %v2142_v52 = vpop.f32.mrb[54].mxu0 }
0x19b2   :  { %2145 = vst [vmem:[%s3389_s2] sm:$0xff] %v2140_v48  ;;  %v2543_v17 = vpop.f32.mrb[55].mxu0 }

</bundles_post_ra>
